<compile_context>
chip_gen: v7x
topology: tpu7x:2x2x1
jax: 0.10.0
libtpu: 0.0.40
codegen_flags: <defaults>
</compile_context>

<pallas_src>
import functools

import jax
import jax.numpy as jnp
from jax.experimental import pallas as pl
from jax.experimental.pallas import tpu as pltpu


# ------------------------------ parameters ---------------------------------

def init_conv(key, cin, cout, k):
    kw, kb = jax.random.split(key)
    fan_in = cin * k * k
    w = jax.random.normal(kw, (cout, cin, k, k), jnp.float32) * jnp.sqrt(2.0 / fan_in)
    b = jax.random.uniform(kb, (cout,), jnp.float32, -1.0, 1.0) / jnp.sqrt(fan_in)
    return {"w": w, "b": b}


def make_inception_c_params(key, conv_1, conv_3, conv_5, conv_3_max=()):
    # conv_3_max is accepted (as in the PyTorch __init__) but unused: the max-pool
    # branch of inception_c has no convolution.
    ks = jax.random.split(key, 5)
    p = {}
    if len(conv_1) != 0:
        p["c1"] = init_conv(ks[0], conv_1[0], conv_1[1], 1)
    if len(conv_3) != 0:
        p["c3a"] = init_conv(ks[1], conv_3[0], conv_3[1], 1)
        p["c3b"] = init_conv(ks[2], conv_3[1], conv_3[2], 3)
    if len(conv_5) != 0:
        p["c5a"] = init_conv(ks[3], conv_5[0], conv_5[1], 1)
        p["c5b"] = init_conv(ks[4], conv_5[1], conv_5[2], 5)
    return p


# ------------------------- weight packing (one-time) -------------------------

def _pack_block_taps(w):
    """OIHW stride-2 conv weight (odd K, pad=(K-1)//2) -> block-space tap matrices.

    Returns (nb, nb, 4*I, O): tap (dyb, dxb) maps the 4 parity groups (parity-major,
    p = 2*ph + pw) of the input block at block offset (dyb-1, dxb-1) to output channels.
    """
    O, I, K, _ = w.shape
    pad = (K - 1) // 2
    nb = (K - 1 - pad) // 2 + 2          # 2 for 3x3, 3 for 5x5
    taps = jnp.zeros((nb, nb, 4 * I, O), jnp.float32)
    for dyb in range(nb):
        for dxb in range(nb):
            for ph in range(2):
                for pw in range(2):
                    kr = 2 * (dyb - 1) + ph + pad
                    kc = 2 * (dxb - 1) + pw + pad
                    if 0 <= kr < K and 0 <= kc < K:
                        g = 2 * ph + pw
                        taps = taps.at[dyb, dxb, g * I:(g + 1) * I, :].set(
                            w[:, :, kr, kc].T)
    return taps


def pack_inception_c_params(params):
    """Torch-layout params -> MXU-ready packed arrays (bf16 weights, f32 bias rows)."""
    pk = {}
    eye4 = jnp.eye(4, dtype=jnp.float32)
    w1_cols, b1_parts = [], []
    for red, body, wkey, bkey in (("c3a", "c3b", "w3", "b3"),
                                  ("c5a", "c5b", "w5", "b5")):
        if red in params:
            m = params[red]["w"][:, :, 0, 0].T                 # (Cin, Cmid)
            w1_cols.append(jnp.kron(eye4, m))                  # block-diag over parity
            b1_parts.append(jnp.tile(params[red]["b"], 4))
            pk[wkey] = _pack_block_taps(params[body]["w"]).astype(jnp.bfloat16)
            pk[bkey] = params[body]["b"].reshape(1, -1).astype(jnp.float32)
    if w1_cols:
        pk["w1"] = jnp.concatenate(w1_cols, axis=1).astype(jnp.bfloat16)
        pk["b1"] = jnp.concatenate(b1_parts).reshape(1, -1).astype(jnp.float32)
    if "c1" in params:
        pk["w1x1"] = params["c1"]["w"][:, :, 0, 0].T.astype(jnp.bfloat16)
        pk["b1x1"] = params["c1"]["b"].reshape(1, -1).astype(jnp.float32)
    return pk


# --------------------------- fused inception kernel --------------------------

def _inception_c_kernel(*refs, has3, has5, pool):
    it = iter(refs)
    x_ref = next(it)                                   # (1, H2, W2, 4*Cin) f32 (s2d layout)
    if has3 or has5:
        w1_ref, b1_ref = next(it), next(it)            # (4Cin, 4*(C3m+C5m)) bf16, (1, .) f32
    if has3:
        w3_ref, b3_ref = next(it), next(it)            # (2, 2, 4*C3m, C3o) bf16, (1, C3o)
    if has5:
        w5_ref, b5_ref = next(it), next(it)            # (3, 3, 4*C5m, C5o) bf16, (1, C5o)
    out_ref = next(it)                                  # (1, H2, W2, Ctot) f32
    h3pad_ref = next(it) if has3 else None              # VMEM scratch, zero-padded
    h5pad_ref = next(it) if has5 else None
    xpad_ref = next(it) if pool else None               # VMEM scratch, -inf padded

    _, H2, W2, C4 = x_ref.shape
    cin = C4 // 4
    M = H2 * W2
    x = x_ref[...]

    branch = []

    # fused 1x1 reductions (c3a | c5a), one block-diagonal bf16 MXU matmul, f32 epilogue.
    if has3 or has5:
        a = x.reshape(M, C4).astype(jnp.bfloat16)
        h = jnp.dot(a, w1_ref[...], preferred_element_type=jnp.float32)
        h = jnp.maximum(h + b1_ref[...], 0.0)           # (M, 4*C3m + 4*C5m), parity-major

    # c3 branch: 3x3 stride-2 conv == 2x2 block conv over parity channels.
    if has3:
        nb3, _, c3k, c3o = w3_ref.shape
        h3pad_ref[...] = jnp.zeros(h3pad_ref.shape, h3pad_ref.dtype)
        h3pad_ref[:, 1:1 + H2, 1:1 + W2, :] = h[:, :c3k].reshape(1, H2, W2, c3k)
        acc = jnp.zeros((M, c3o), jnp.float32)
        for dyb in range(nb3):
            for dxb in range(nb3):
                tap = h3pad_ref[:, dyb:dyb + H2, dxb:dxb + W2, :]
                acc = acc + jnp.dot(tap.reshape(M, c3k).astype(jnp.bfloat16),
                                    w3_ref[dyb, dxb],
                                    preferred_element_type=jnp.float32)
        branch.append(jnp.maximum(acc + b3_ref[...], 0.0))

    # c5 branch: 5x5 stride-2 conv == 3x3 block conv over parity channels.
    if has5:
        nb5, _, c5k, c5o = w5_ref.shape
        off = w3_ref.shape[2] if has3 else 0
        h5pad_ref[...] = jnp.zeros(h5pad_ref.shape, h5pad_ref.dtype)
        h5pad_ref[:, 1:1 + H2, 1:1 + W2, :] = h[:, off:off + c5k].reshape(1, H2, W2, c5k)
        acc = jnp.zeros((M, c5o), jnp.float32)
        for dyb in range(nb5):
            for dxb in range(nb5):
                tap = h5pad_ref[:, dyb:dyb + H2, dxb:dxb + W2, :]
                acc = acc + jnp.dot(tap.reshape(M, c5k).astype(jnp.bfloat16),
                                    w5_ref[dyb, dxb],
                                    preferred_element_type=jnp.float32)
        branch.append(jnp.maximum(acc + b5_ref[...], 0.0))

    # maxpool 3x3 stride-2 pad-1: max over 9 (block-offset, parity) taps, exact f32.
    if pool:
        xpad_ref[...] = jnp.full(xpad_ref.shape, -jnp.inf, dtype=xpad_ref.dtype)
        xpad_ref[:, 1:1 + H2, 1:1 + W2, :] = x
        res = None
        for dy in range(3):
            a0, ph = (0, 1) if dy == 0 else (1, (dy + 1) % 2)
            for dx in range(3):
                b0, pw = (0, 1) if dx == 0 else (1, (dx + 1) % 2)
                g = 2 * ph + pw
                tap = xpad_ref[:, a0:a0 + H2, b0:b0 + W2, g * cin:(g + 1) * cin]
                res = tap if res is None else jnp.maximum(res, tap)
        branch.append(res.reshape(M, cin))

    out = branch[0] if len(branch) == 1 else jnp.concatenate(branch, axis=-1)
    out_ref[...] = out.reshape(1, H2, W2, out.shape[-1])


# ------------------- optional stride-1 conv_1 branch (1x1 + ReLU) -------------------

def _conv1x1_kernel(a_ref, w_ref, b_ref, o_ref):
    acc = jnp.dot(a_ref[...].astype(jnp.bfloat16), w_ref[...],
                  preferred_element_type=jnp.float32)
    o_ref[...] = jnp.maximum(acc + b_ref[...], 0.0)


def _conv1x1_relu_nchw(x_nchw, w_mat, b_row):
    N, C, H, W = x_nchw.shape
    Co = w_mat.shape[1]
    a = jnp.transpose(x_nchw, (0, 2, 3, 1)).reshape(N * H * W, C)
    out = pl.pallas_call(
        _conv1x1_kernel,
        out_shape=jax.ShapeDtypeStruct((N * H * W, Co), jnp.float32),
        grid=(1,),
        in_specs=[pl.BlockSpec(a.shape, lambda i: (0, 0)),
                  pl.BlockSpec(w_mat.shape, lambda i: (0, 0)),
                  pl.BlockSpec(b_row.shape, lambda i: (0, 0))],
        out_specs=pl.BlockSpec((N * H * W, Co), lambda i: (0, 0)),
    )(a, w_mat, b_row)
    return jnp.transpose(out.reshape(N, H, W, Co), (0, 3, 1, 2))


# ------------------------------- forward pass --------------------------------

def inception_c_forward(packed, x_nchw, *, use_max_pool=True):
    """inception_c.forward: branch outputs concatenated along channels (NCHW in/out)."""
    has3 = "w3" in packed
    has5 = "w5" in packed
    has1 = "w1x1" in packed
    N, C, H, W = x_nchw.shape
    x = jnp.asarray(x_nchw, jnp.float32)

    if not (has3 or has5 or use_max_pool):
        if not has1:
            raise ValueError("inception_c with no branches")
        return _conv1x1_relu_nchw(x, packed["w1x1"], packed["b1x1"])

    assert H % 2 == 0 and W % 2 == 0, "stride-2 branches expect even spatial dims"
    H2, W2 = H // 2, W // 2
    # Space-to-depth once (also subsumes the NCHW->NHWC transpose):
    # channel index = (2*ph + pw)*C + c  (parity-major, lane-dense).
    xs2d = (x.reshape(N, C, H2, 2, W2, 2)
            .transpose(0, 2, 4, 3, 5, 1)
            .reshape(N, H2, W2, 4 * C))

    c3o = packed["w3"].shape[3] if has3 else 0
    c5o = packed["w5"].shape[3] if has5 else 0
    ctot = c3o + c5o + (C if use_max_pool else 0)

    def full_spec(arr):
        nd = arr.ndim
        return pl.BlockSpec(arr.shape, lambda n, _nd=nd: (0,) * _nd)

    inputs = [xs2d]
    in_specs = [pl.BlockSpec((1, H2, W2, 4 * C), lambda n: (n, 0, 0, 0))]
    if has3 or has5:
        inputs += [packed["w1"], packed["b1"]]
        in_specs += [full_spec(packed["w1"]), full_spec(packed["b1"])]
    if has3:
        inputs += [packed["w3"], packed["b3"]]
        in_specs += [full_spec(packed["w3"]), full_spec(packed["b3"])]
    if has5:
        inputs += [packed["w5"], packed["b5"]]
        in_specs += [full_spec(packed["w5"]), full_spec(packed["b5"])]

    scratch = []
    if has3:
        nb = packed["w3"].shape[0]
        scratch.append(pltpu.VMEM((1, H2 + nb - 1, W2 + nb - 1, packed["w3"].shape[2]),
                                  jnp.float32))
    if has5:
        nb = packed["w5"].shape[0]
        scratch.append(pltpu.VMEM((1, H2 + nb - 1, W2 + nb - 1, packed["w5"].shape[2]),
                                  jnp.float32))
    if use_max_pool:
        scratch.append(pltpu.VMEM((1, H2 + 1, W2 + 1, 4 * C), jnp.float32))

    out_nhwc = pl.pallas_call(
        functools.partial(_inception_c_kernel, has3=has3, has5=has5, pool=use_max_pool),
        out_shape=jax.ShapeDtypeStruct((N, H2, W2, ctot), jnp.float32),
        grid=(N,),
        in_specs=in_specs,
        out_specs=pl.BlockSpec((1, H2, W2, ctot), lambda n: (n, 0, 0, 0)),
        scratch_shapes=scratch,
        compiler_params=pltpu.CompilerParams(dimension_semantics=("parallel",)),
    )(*inputs)

    out = jnp.transpose(out_nhwc, (0, 3, 1, 2))                 # NHWC -> NCHW
    if has1:
        # TODO(synk): like the reference module, a non-empty conv_1 stays stride 1 (HxW),
        # so this concat only type-checks when conv_1 is the only branch (mirrors the
        # reference's own torch.cat constraint).
        c1 = _conv1x1_relu_nchw(x, packed["w1x1"], packed["b1x1"])
        out = jnp.concatenate([c1, out], axis=1)
    return out


# ----------------------- pure-XLA reference (for checking) -----------------------

def _reference_forward(params, x_nchw, *, use_max_pool=True):
    def conv(h, p, stride, pad):
        y = jax.lax.conv_general_dilated(
            h, p["w"], (stride, stride), ((pad, pad), (pad, pad)),
            dimension_numbers=("NCHW", "OIHW", "NCHW"))
        return jax.nn.relu(y + p["b"][None, :, None, None])

    outs = []
    if "c1" in params:
        outs.append(conv(x_nchw, params["c1"], 1, 0))
    if "c3a" in params:
        outs.append(conv(conv(x_nchw, params["c3a"], 1, 0), params["c3b"], 2, 1))
    if "c5a" in params:
        outs.append(conv(conv(x_nchw, params["c5a"], 1, 0), params["c5b"], 2, 2))
    if use_max_pool:
        outs.append(jax.lax.reduce_window(
            x_nchw, -jnp.inf, jax.lax.max,
            (1, 1, 3, 3), (1, 1, 2, 2), ((0, 0), (0, 0), (1, 1), (1, 1))))
    return jnp.concatenate(outs, axis=1)


# ---------------------------------- main ------------------------------------

if __name__ == "__main__":
    key = jax.random.PRNGKey(0)
    pkey, xkey = jax.random.split(key)

    # inception_c([], [32, 16, 32], [32, 8, 16], [], use_max_pool=True)
    conv_1, conv_3, conv_5 = [], [32, 16, 32], [32, 8, 16]
    params = make_inception_c_params(pkey, conv_1, conv_3, conv_5, [])
    packed = pack_inception_c_params(params)

    x = jax.random.normal(xkey, (2, 32, 16, 16), jnp.float32)    # NCHW, like PyTorch

    fwd = jax.jit(functools.partial(inception_c_forward, use_max_pool=True))
    out = fwd(packed, x)
    jax.block_until_ready(out)

    assert out.shape == (2, conv_3[2] + conv_5[2] + 32, 8, 8), out.shape
    assert out.dtype == jnp.float32

    # Correctness vs a pure-XLA f32 reference (kernel uses bf16 MXU operands -> loose tol).
    ref = _reference_forward(params, x, use_max_pool=True)
    err = float(jnp.max(jnp.abs(out - ref) / (0.05 * jnp.abs(ref) + 0.1)))
    assert err <= 1.0, f"mismatch vs reference: {err}"

    print("KERNEL_OK")
</pallas_src>

<mosaic_0001>
module attributes {stable_mosaic.version = 11 : i64} {
  func.func @_inception_c_kernel(%arg0: i32, %arg1: memref<1x8x8x128xf32, #tpu.memory_space<vmem>>, %arg2: memref<128x96xbf16, #tpu.memory_space<vmem>>, %arg3: memref<1x96xf32, #tpu.memory_space<vmem>>, %arg4: memref<2x2x64x32xbf16, #tpu.memory_space<vmem>>, %arg5: memref<1x32xf32, #tpu.memory_space<vmem>>, %arg6: memref<3x3x32x16xbf16, #tpu.memory_space<vmem>>, %arg7: memref<1x16xf32, #tpu.memory_space<vmem>>, %arg8: memref<1x8x8x80xf32, #tpu.memory_space<vmem>>, %arg9: memref<1x9x9x64xf32, #tpu.memory_space<vmem>>, %arg10: memref<1x10x10x32xf32, #tpu.memory_space<vmem>>, %arg11: memref<1x9x9x128xf32, #tpu.memory_space<vmem>>) attributes {dimension_semantics = [#tpu.dimension_semantics<parallel>], iteration_bounds = array<i64: 2>, scalar_prefetch = 0 : i64, scratch_operands = 3 : i64, tpu.core_type = #tpu.core_type<tc>, window_params = [{transform_indices = @transform_0, window_bounds = array<i64: 1, 8, 8, 128>}, {pipeline_mode = #tpu.pipeline_mode<synchronous>, transform_indices = @transform_1, window_bounds = array<i64: 128, 96>}, {pipeline_mode = #tpu.pipeline_mode<synchronous>, transform_indices = @transform_2, window_bounds = array<i64: 1, 96>}, {pipeline_mode = #tpu.pipeline_mode<synchronous>, transform_indices = @transform_3, window_bounds = array<i64: 2, 2, 64, 32>}, {pipeline_mode = #tpu.pipeline_mode<synchronous>, transform_indices = @transform_4, window_bounds = array<i64: 1, 32>}, {pipeline_mode = #tpu.pipeline_mode<synchronous>, transform_indices = @transform_5, window_bounds = array<i64: 3, 3, 32, 16>}, {pipeline_mode = #tpu.pipeline_mode<synchronous>, transform_indices = @transform_6, window_bounds = array<i64: 1, 16>}, {transform_indices = @transform_7, window_bounds = array<i64: 1, 8, 8, 80>}]} {
    %c0 = arith.constant 0 : index
    %c0_0 = arith.constant 0 : index
    %c0_1 = arith.constant 0 : index
    %c0_2 = arith.constant 0 : index
    %0 = vector.load %arg1[%c0, %c0_0, %c0_1, %c0_2] : memref<1x8x8x128xf32, #tpu.memory_space<vmem>>, vector<1x8x8x128xf32>
    %1 = vector.shape_cast %0 : vector<1x8x8x128xf32> to vector<64x128xf32>
    %2 = arith.truncf %1 : vector<64x128xf32> to vector<64x128xbf16>
    %c0_3 = arith.constant 0 : index
    %c0_4 = arith.constant 0 : index
    %3 = vector.load %arg2[%c0_3, %c0_4] : memref<128x96xbf16, #tpu.memory_space<vmem>>, vector<128x96xbf16>
    %cst = arith.constant dense<0.000000e+00> : vector<64x96xf32>
    %4 = tpu.matmul %2, %3, %cst {dimension_numbers = #tpu.dot_dimension_numbers<[1], [0], [0], [1], [0, 0, 1, 1], [], []>} : vector<64x128xbf16>, vector<128x96xbf16>, vector<64x96xf32> -> vector<64x96xf32>
    %c0_5 = arith.constant 0 : index
    %c0_6 = arith.constant 0 : index
    %5 = vector.load %arg3[%c0_5, %c0_6] : memref<1x96xf32, #tpu.memory_space<vmem>>, vector<1x96xf32>
    %6 = vector.broadcast %5 : vector<1x96xf32> to vector<64x96xf32>
    %7 = arith.addf %4, %6 : vector<64x96xf32>
    %cst_7 = arith.constant 0.000000e+00 : f32
    %8 = vector.broadcast %cst_7 : f32 to vector<64x96xf32>
    %9 = arith.maximumf %7, %8 : vector<64x96xf32>
    %cst_8 = arith.constant 0.000000e+00 : f32
    %10 = vector.broadcast %cst_8 : f32 to vector<1x9x9x64xf32>
    %c0_9 = arith.constant 0 : index
    %c0_10 = arith.constant 0 : index
    %c0_11 = arith.constant 0 : index
    %c0_12 = arith.constant 0 : index
    %11 = vector.load %arg9[%c0_9, %c0_10, %c0_11, %c0_12] : memref<1x9x9x64xf32, #tpu.memory_space<vmem>>, vector<1x9x9x64xf32>
    tpu.vector_store %arg9[%c0_9, %c0_10, %c0_11, %c0_12], %10 {strides = array<i32>} : memref<1x9x9x64xf32, #tpu.memory_space<vmem>>, vector<1x9x9x64xf32>,
    %12 = vector.extract_strided_slice %9 {offsets = [0, 0], sizes = [64, 64], strides = [1, 1]} : vector<64x96xf32> to vector<64x64xf32>
    %13 = vector.shape_cast %12 : vector<64x64xf32> to vector<1x8x8x64xf32>
    %c0_13 = arith.constant 0 : index
    %c1 = arith.constant 1 : index
    %c1_14 = arith.constant 1 : index
    %c0_15 = arith.constant 0 : index
    %14 = vector.load %arg9[%c0_13, %c1, %c1_14, %c0_15] : memref<1x9x9x64xf32, #tpu.memory_space<vmem>>, vector<1x8x8x64xf32>
    tpu.vector_store %arg9[%c0_13, %c1, %c1_14, %c0_15], %13 {strides = array<i32>} : memref<1x9x9x64xf32, #tpu.memory_space<vmem>>, vector<1x8x8x64xf32>,
    %cst_16 = arith.constant 0.000000e+00 : f32
    %15 = vector.broadcast %cst_16 : f32 to vector<64x32xf32>
    %c0_17 = arith.constant 0 : index
    %c0_18 = arith.constant 0 : index
    %c0_19 = arith.constant 0 : index
    %c0_20 = arith.constant 0 : index
    %16 = vector.load %arg9[%c0_17, %c0_18, %c0_19, %c0_20] : memref<1x9x9x64xf32, #tpu.memory_space<vmem>>, vector<1x8x8x64xf32>
    %17 = vector.shape_cast %16 : vector<1x8x8x64xf32> to vector<64x64xf32>
    %18 = arith.truncf %17 : vector<64x64xf32> to vector<64x64xbf16>
    %c0_21 = arith.constant 0 : index
    %c0_22 = arith.constant 0 : index
    %c0_23 = arith.constant 0 : index
    %c0_24 = arith.constant 0 : index
    %19 = vector.load %arg4[%c0_21, %c0_22, %c0_23, %c0_24] : memref<2x2x64x32xbf16, #tpu.memory_space<vmem>>, vector<1x1x64x32xbf16>
    %20 = vector.shape_cast %19 : vector<1x1x64x32xbf16> to vector<64x32xbf16>
    %cst_25 = arith.constant dense<0.000000e+00> : vector<64x32xf32>
    %21 = tpu.matmul %18, %20, %cst_25 {dimension_numbers = #tpu.dot_dimension_numbers<[1], [0], [0], [1], [0, 0, 1, 1], [], []>} : vector<64x64xbf16>, vector<64x32xbf16>, vector<64x32xf32> -> vector<64x32xf32>
    %22 = arith.addf %15, %21 : vector<64x32xf32>
    %c0_26 = arith.constant 0 : index
    %c0_27 = arith.constant 0 : index
    %c1_28 = arith.constant 1 : index
    %c0_29 = arith.constant 0 : index
    %23 = vector.load %arg9[%c0_26, %c0_27, %c1_28, %c0_29] : memref<1x9x9x64xf32, #tpu.memory_space<vmem>>, vector<1x8x8x64xf32>
    %24 = vector.shape_cast %23 : vector<1x8x8x64xf32> to vector<64x64xf32>
    %25 = arith.truncf %24 : vector<64x64xf32> to vector<64x64xbf16>
    %c0_30 = arith.constant 0 : index
    %c1_31 = arith.constant 1 : index
    %c0_32 = arith.constant 0 : index
    %c0_33 = arith.constant 0 : index
    %26 = vector.load %arg4[%c0_30, %c1_31, %c0_32, %c0_33] : memref<2x2x64x32xbf16, #tpu.memory_space<vmem>>, vector<1x1x64x32xbf16>
    %27 = vector.shape_cast %26 : vector<1x1x64x32xbf16> to vector<64x32xbf16>
    %cst_34 = arith.constant dense<0.000000e+00> : vector<64x32xf32>
    %28 = tpu.matmul %25, %27, %cst_34 {dimension_numbers = #tpu.dot_dimension_numbers<[1], [0], [0], [1], [0, 0, 1, 1], [], []>} : vector<64x64xbf16>, vector<64x32xbf16>, vector<64x32xf32> -> vector<64x32xf32>
    %29 = arith.addf %22, %28 : vector<64x32xf32>
    %c0_35 = arith.constant 0 : index
    %c1_36 = arith.constant 1 : index
    %c0_37 = arith.constant 0 : index
    %c0_38 = arith.constant 0 : index
    %30 = vector.load %arg9[%c0_35, %c1_36, %c0_37, %c0_38] : memref<1x9x9x64xf32, #tpu.memory_space<vmem>>, vector<1x8x8x64xf32>
    %31 = vector.shape_cast %30 : vector<1x8x8x64xf32> to vector<64x64xf32>
    %32 = arith.truncf %31 : vector<64x64xf32> to vector<64x64xbf16>
    %c1_39 = arith.constant 1 : index
    %c0_40 = arith.constant 0 : index
    %c0_41 = arith.constant 0 : index
    %c0_42 = arith.constant 0 : index
    %33 = vector.load %arg4[%c1_39, %c0_40, %c0_41, %c0_42] : memref<2x2x64x32xbf16, #tpu.memory_space<vmem>>, vector<1x1x64x32xbf16>
    %34 = vector.shape_cast %33 : vector<1x1x64x32xbf16> to vector<64x32xbf16>
    %cst_43 = arith.constant dense<0.000000e+00> : vector<64x32xf32>
    %35 = tpu.matmul %32, %34, %cst_43 {dimension_numbers = #tpu.dot_dimension_numbers<[1], [0], [0], [1], [0, 0, 1, 1], [], []>} : vector<64x64xbf16>, vector<64x32xbf16>, vector<64x32xf32> -> vector<64x32xf32>
    %36 = arith.addf %29, %35 : vector<64x32xf32>
    %c0_44 = arith.constant 0 : index
    %c1_45 = arith.constant 1 : index
    %c1_46 = arith.constant 1 : index
    %c0_47 = arith.constant 0 : index
    %37 = vector.load %arg9[%c0_44, %c1_45, %c1_46, %c0_47] : memref<1x9x9x64xf32, #tpu.memory_space<vmem>>, vector<1x8x8x64xf32>
    %38 = vector.shape_cast %37 : vector<1x8x8x64xf32> to vector<64x64xf32>
    %39 = arith.truncf %38 : vector<64x64xf32> to vector<64x64xbf16>
    %c1_48 = arith.constant 1 : index
    %c1_49 = arith.constant 1 : index
    %c0_50 = arith.constant 0 : index
    %c0_51 = arith.constant 0 : index
    %40 = vector.load %arg4[%c1_48, %c1_49, %c0_50, %c0_51] : memref<2x2x64x32xbf16, #tpu.memory_space<vmem>>, vector<1x1x64x32xbf16>
    %41 = vector.shape_cast %40 : vector<1x1x64x32xbf16> to vector<64x32xbf16>
    %cst_52 = arith.constant dense<0.000000e+00> : vector<64x32xf32>
    %42 = tpu.matmul %39, %41, %cst_52 {dimension_numbers = #tpu.dot_dimension_numbers<[1], [0], [0], [1], [0, 0, 1, 1], [], []>} : vector<64x64xbf16>, vector<64x32xbf16>, vector<64x32xf32> -> vector<64x32xf32>
    %43 = arith.addf %36, %42 : vector<64x32xf32>
    %c0_53 = arith.constant 0 : index
    %c0_54 = arith.constant 0 : index
    %44 = vector.load %arg5[%c0_53, %c0_54] : memref<1x32xf32, #tpu.memory_space<vmem>>, vector<1x32xf32>
    %45 = vector.broadcast %44 : vector<1x32xf32> to vector<64x32xf32>
    %46 = arith.addf %43, %45 : vector<64x32xf32>
    %cst_55 = arith.constant 0.000000e+00 : f32
    %47 = vector.broadcast %cst_55 : f32 to vector<64x32xf32>
    %48 = arith.maximumf %46, %47 : vector<64x32xf32>
    %cst_56 = arith.constant 0.000000e+00 : f32
    %49 = vector.broadcast %cst_56 : f32 to vector<1x10x10x32xf32>
    %c0_57 = arith.constant 0 : index
    %c0_58 = arith.constant 0 : index
    %c0_59 = arith.constant 0 : index
    %c0_60 = arith.constant 0 : index
    %50 = vector.load %arg10[%c0_57, %c0_58, %c0_59, %c0_60] : memref<1x10x10x32xf32, #tpu.memory_space<vmem>>, vector<1x10x10x32xf32>
    tpu.vector_store %arg10[%c0_57, %c0_58, %c0_59, %c0_60], %49 {strides = array<i32>} : memref<1x10x10x32xf32, #tpu.memory_space<vmem>>, vector<1x10x10x32xf32>,
    %51 = vector.extract_strided_slice %9 {offsets = [0, 64], sizes = [64, 32], strides = [1, 1]} : vector<64x96xf32> to vector<64x32xf32>
    %52 = vector.shape_cast %51 : vector<64x32xf32> to vector<1x8x8x32xf32>
    %c0_61 = arith.constant 0 : index
    %c1_62 = arith.constant 1 : index
    %c1_63 = arith.constant 1 : index
    %c0_64 = arith.constant 0 : index
    %53 = vector.load %arg10[%c0_61, %c1_62, %c1_63, %c0_64] : memref<1x10x10x32xf32, #tpu.memory_space<vmem>>, vector<1x8x8x32xf32>
    tpu.vector_store %arg10[%c0_61, %c1_62, %c1_63, %c0_64], %52 {strides = array<i32>} : memref<1x10x10x32xf32, #tpu.memory_space<vmem>>, vector<1x8x8x32xf32>,
    %cst_65 = arith.constant 0.000000e+00 : f32
    %54 = vector.broadcast %cst_65 : f32 to vector<64x16xf32>
    %c0_66 = arith.constant 0 : index
    %c0_67 = arith.constant 0 : index
    %c0_68 = arith.constant 0 : index
    %c0_69 = arith.constant 0 : index
    %55 = vector.load %arg10[%c0_66, %c0_67, %c0_68, %c0_69] : memref<1x10x10x32xf32, #tpu.memory_space<vmem>>, vector<1x8x8x32xf32>
    %56 = vector.shape_cast %55 : vector<1x8x8x32xf32> to vector<64x32xf32>
    %57 = arith.truncf %56 : vector<64x32xf32> to vector<64x32xbf16>
    %c0_70 = arith.constant 0 : index
    %c0_71 = arith.constant 0 : index
    %c0_72 = arith.constant 0 : index
    %c0_73 = arith.constant 0 : index
    %58 = vector.load %arg6[%c0_70, %c0_71, %c0_72, %c0_73] : memref<3x3x32x16xbf16, #tpu.memory_space<vmem>>, vector<1x1x32x16xbf16>
    %59 = vector.shape_cast %58 : vector<1x1x32x16xbf16> to vector<32x16xbf16>
    %cst_74 = arith.constant dense<0.000000e+00> : vector<64x16xf32>
    %60 = tpu.matmul %57, %59, %cst_74 {dimension_numbers = #tpu.dot_dimension_numbers<[1], [0], [0], [1], [0, 0, 1, 1], [], []>} : vector<64x32xbf16>, vector<32x16xbf16>, vector<64x16xf32> -> vector<64x16xf32>
    %61 = arith.addf %54, %60 : vector<64x16xf32>
    %c0_75 = arith.constant 0 : index
    %c0_76 = arith.constant 0 : index
    %c1_77 = arith.constant 1 : index
    %c0_78 = arith.constant 0 : index
    %62 = vector.load %arg10[%c0_75, %c0_76, %c1_77, %c0_78] : memref<1x10x10x32xf32, #tpu.memory_space<vmem>>, vector<1x8x8x32xf32>
    %63 = vector.shape_cast %62 : vector<1x8x8x32xf32> to vector<64x32xf32>
    %64 = arith.truncf %63 : vector<64x32xf32> to vector<64x32xbf16>
    %c0_79 = arith.constant 0 : index
    %c1_80 = arith.constant 1 : index
    %c0_81 = arith.constant 0 : index
    %c0_82 = arith.constant 0 : index
    %65 = vector.load %arg6[%c0_79, %c1_80, %c0_81, %c0_82] : memref<3x3x32x16xbf16, #tpu.memory_space<vmem>>, vector<1x1x32x16xbf16>
    %66 = vector.shape_cast %65 : vector<1x1x32x16xbf16> to vector<32x16xbf16>
    %cst_83 = arith.constant dense<0.000000e+00> : vector<64x16xf32>
    %67 = tpu.matmul %64, %66, %cst_83 {dimension_numbers = #tpu.dot_dimension_numbers<[1], [0], [0], [1], [0, 0, 1, 1], [], []>} : vector<64x32xbf16>, vector<32x16xbf16>, vector<64x16xf32> -> vector<64x16xf32>
    %68 = arith.addf %61, %67 : vector<64x16xf32>
    %c0_84 = arith.constant 0 : index
    %c0_85 = arith.constant 0 : index
    %c2 = arith.constant 2 : index
    %c0_86 = arith.constant 0 : index
    %69 = vector.load %arg10[%c0_84, %c0_85, %c2, %c0_86] : memref<1x10x10x32xf32, #tpu.memory_space<vmem>>, vector<1x8x8x32xf32>
    %70 = vector.shape_cast %69 : vector<1x8x8x32xf32> to vector<64x32xf32>
    %71 = arith.truncf %70 : vector<64x32xf32> to vector<64x32xbf16>
    %c0_87 = arith.constant 0 : index
    %c2_88 = arith.constant 2 : index
    %c0_89 = arith.constant 0 : index
    %c0_90 = arith.constant 0 : index
    %72 = vector.load %arg6[%c0_87, %c2_88, %c0_89, %c0_90] : memref<3x3x32x16xbf16, #tpu.memory_space<vmem>>, vector<1x1x32x16xbf16>
    %73 = vector.shape_cast %72 : vector<1x1x32x16xbf16> to vector<32x16xbf16>
    %cst_91 = arith.constant dense<0.000000e+00> : vector<64x16xf32>
    %74 = tpu.matmul %71, %73, %cst_91 {dimension_numbers = #tpu.dot_dimension_numbers<[1], [0], [0], [1], [0, 0, 1, 1], [], []>} : vector<64x32xbf16>, vector<32x16xbf16>, vector<64x16xf32> -> vector<64x16xf32>
    %75 = arith.addf %68, %74 : vector<64x16xf32>
    %c0_92 = arith.constant 0 : index
    %c1_93 = arith.constant 1 : index
    %c0_94 = arith.constant 0 : index
    %c0_95 = arith.constant 0 : index
    %76 = vector.load %arg10[%c0_92, %c1_93, %c0_94, %c0_95] : memref<1x10x10x32xf32, #tpu.memory_space<vmem>>, vector<1x8x8x32xf32>
    %77 = vector.shape_cast %76 : vector<1x8x8x32xf32> to vector<64x32xf32>
    %78 = arith.truncf %77 : vector<64x32xf32> to vector<64x32xbf16>
    %c1_96 = arith.constant 1 : index
    %c0_97 = arith.constant 0 : index
    %c0_98 = arith.constant 0 : index
    %c0_99 = arith.constant 0 : index
    %79 = vector.load %arg6[%c1_96, %c0_97, %c0_98, %c0_99] : memref<3x3x32x16xbf16, #tpu.memory_space<vmem>>, vector<1x1x32x16xbf16>
    %80 = vector.shape_cast %79 : vector<1x1x32x16xbf16> to vector<32x16xbf16>
    %cst_100 = arith.constant dense<0.000000e+00> : vector<64x16xf32>
    %81 = tpu.matmul %78, %80, %cst_100 {dimension_numbers = #tpu.dot_dimension_numbers<[1], [0], [0], [1], [0, 0, 1, 1], [], []>} : vector<64x32xbf16>, vector<32x16xbf16>, vector<64x16xf32> -> vector<64x16xf32>
    %82 = arith.addf %75, %81 : vector<64x16xf32>
    %c0_101 = arith.constant 0 : index
    %c1_102 = arith.constant 1 : index
    %c1_103 = arith.constant 1 : index
    %c0_104 = arith.constant 0 : index
    %83 = vector.load %arg10[%c0_101, %c1_102, %c1_103, %c0_104] : memref<1x10x10x32xf32, #tpu.memory_space<vmem>>, vector<1x8x8x32xf32>
    %84 = vector.shape_cast %83 : vector<1x8x8x32xf32> to vector<64x32xf32>
    %85 = arith.truncf %84 : vector<64x32xf32> to vector<64x32xbf16>
    %c1_105 = arith.constant 1 : index
    %c1_106 = arith.constant 1 : index
    %c0_107 = arith.constant 0 : index
    %c0_108 = arith.constant 0 : index
    %86 = vector.load %arg6[%c1_105, %c1_106, %c0_107, %c0_108] : memref<3x3x32x16xbf16, #tpu.memory_space<vmem>>, vector<1x1x32x16xbf16>
    %87 = vector.shape_cast %86 : vector<1x1x32x16xbf16> to vector<32x16xbf16>
    %cst_109 = arith.constant dense<0.000000e+00> : vector<64x16xf32>
    %88 = tpu.matmul %85, %87, %cst_109 {dimension_numbers = #tpu.dot_dimension_numbers<[1], [0], [0], [1], [0, 0, 1, 1], [], []>} : vector<64x32xbf16>, vector<32x16xbf16>, vector<64x16xf32> -> vector<64x16xf32>
    %89 = arith.addf %82, %88 : vector<64x16xf32>
    %c0_110 = arith.constant 0 : index
    %c1_111 = arith.constant 1 : index
    %c2_112 = arith.constant 2 : index
    %c0_113 = arith.constant 0 : index
    %90 = vector.load %arg10[%c0_110, %c1_111, %c2_112, %c0_113] : memref<1x10x10x32xf32, #tpu.memory_space<vmem>>, vector<1x8x8x32xf32>
    %91 = vector.shape_cast %90 : vector<1x8x8x32xf32> to vector<64x32xf32>
    %92 = arith.truncf %91 : vector<64x32xf32> to vector<64x32xbf16>
    %c1_114 = arith.constant 1 : index
    %c2_115 = arith.constant 2 : index
    %c0_116 = arith.constant 0 : index
    %c0_117 = arith.constant 0 : index
    %93 = vector.load %arg6[%c1_114, %c2_115, %c0_116, %c0_117] : memref<3x3x32x16xbf16, #tpu.memory_space<vmem>>, vector<1x1x32x16xbf16>
    %94 = vector.shape_cast %93 : vector<1x1x32x16xbf16> to vector<32x16xbf16>
    %cst_118 = arith.constant dense<0.000000e+00> : vector<64x16xf32>
    %95 = tpu.matmul %92, %94, %cst_118 {dimension_numbers = #tpu.dot_dimension_numbers<[1], [0], [0], [1], [0, 0, 1, 1], [], []>} : vector<64x32xbf16>, vector<32x16xbf16>, vector<64x16xf32> -> vector<64x16xf32>
    %96 = arith.addf %89, %95 : vector<64x16xf32>
    %c0_119 = arith.constant 0 : index
    %c2_120 = arith.constant 2 : index
    %c0_121 = arith.constant 0 : index
    %c0_122 = arith.constant 0 : index
    %97 = vector.load %arg10[%c0_119, %c2_120, %c0_121, %c0_122] : memref<1x10x10x32xf32, #tpu.memory_space<vmem>>, vector<1x8x8x32xf32>
    %98 = vector.shape_cast %97 : vector<1x8x8x32xf32> to vector<64x32xf32>
    %99 = arith.truncf %98 : vector<64x32xf32> to vector<64x32xbf16>
    %c2_123 = arith.constant 2 : index
    %c0_124 = arith.constant 0 : index
    %c0_125 = arith.constant 0 : index
    %c0_126 = arith.constant 0 : index
    %100 = vector.load %arg6[%c2_123, %c0_124, %c0_125, %c0_126] : memref<3x3x32x16xbf16, #tpu.memory_space<vmem>>, vector<1x1x32x16xbf16>
    %101 = vector.shape_cast %100 : vector<1x1x32x16xbf16> to vector<32x16xbf16>
    %cst_127 = arith.constant dense<0.000000e+00> : vector<64x16xf32>
    %102 = tpu.matmul %99, %101, %cst_127 {dimension_numbers = #tpu.dot_dimension_numbers<[1], [0], [0], [1], [0, 0, 1, 1], [], []>} : vector<64x32xbf16>, vector<32x16xbf16>, vector<64x16xf32> -> vector<64x16xf32>
    %103 = arith.addf %96, %102 : vector<64x16xf32>
    %c0_128 = arith.constant 0 : index
    %c2_129 = arith.constant 2 : index
    %c1_130 = arith.constant 1 : index
    %c0_131 = arith.constant 0 : index
    %104 = vector.load %arg10[%c0_128, %c2_129, %c1_130, %c0_131] : memref<1x10x10x32xf32, #tpu.memory_space<vmem>>, vector<1x8x8x32xf32>
    %105 = vector.shape_cast %104 : vector<1x8x8x32xf32> to vector<64x32xf32>
    %106 = arith.truncf %105 : vector<64x32xf32> to vector<64x32xbf16>
    %c2_132 = arith.constant 2 : index
    %c1_133 = arith.constant 1 : index
    %c0_134 = arith.constant 0 : index
    %c0_135 = arith.constant 0 : index
    %107 = vector.load %arg6[%c2_132, %c1_133, %c0_134, %c0_135] : memref<3x3x32x16xbf16, #tpu.memory_space<vmem>>, vector<1x1x32x16xbf16>
    %108 = vector.shape_cast %107 : vector<1x1x32x16xbf16> to vector<32x16xbf16>
    %cst_136 = arith.constant dense<0.000000e+00> : vector<64x16xf32>
    %109 = tpu.matmul %106, %108, %cst_136 {dimension_numbers = #tpu.dot_dimension_numbers<[1], [0], [0], [1], [0, 0, 1, 1], [], []>} : vector<64x32xbf16>, vector<32x16xbf16>, vector<64x16xf32> -> vector<64x16xf32>
    %110 = arith.addf %103, %109 : vector<64x16xf32>
    %c0_137 = arith.constant 0 : index
    %c2_138 = arith.constant 2 : index
    %c2_139 = arith.constant 2 : index
    %c0_140 = arith.constant 0 : index
    %111 = vector.load %arg10[%c0_137, %c2_138, %c2_139, %c0_140] : memref<1x10x10x32xf32, #tpu.memory_space<vmem>>, vector<1x8x8x32xf32>
    %112 = vector.shape_cast %111 : vector<1x8x8x32xf32> to vector<64x32xf32>
    %113 = arith.truncf %112 : vector<64x32xf32> to vector<64x32xbf16>
    %c2_141 = arith.constant 2 : index
    %c2_142 = arith.constant 2 : index
    %c0_143 = arith.constant 0 : index
    %c0_144 = arith.constant 0 : index
    %114 = vector.load %arg6[%c2_141, %c2_142, %c0_143, %c0_144] : memref<3x3x32x16xbf16, #tpu.memory_space<vmem>>, vector<1x1x32x16xbf16>
    %115 = vector.shape_cast %114 : vector<1x1x32x16xbf16> to vector<32x16xbf16>
    %cst_145 = arith.constant dense<0.000000e+00> : vector<64x16xf32>
    %116 = tpu.matmul %113, %115, %cst_145 {dimension_numbers = #tpu.dot_dimension_numbers<[1], [0], [0], [1], [0, 0, 1, 1], [], []>} : vector<64x32xbf16>, vector<32x16xbf16>, vector<64x16xf32> -> vector<64x16xf32>
    %117 = arith.addf %110, %116 : vector<64x16xf32>
    %c0_146 = arith.constant 0 : index
    %c0_147 = arith.constant 0 : index
    %118 = vector.load %arg7[%c0_146, %c0_147] : memref<1x16xf32, #tpu.memory_space<vmem>>, vector<1x16xf32>
    %119 = vector.broadcast %118 : vector<1x16xf32> to vector<64x16xf32>
    %120 = arith.addf %117, %119 : vector<64x16xf32>
    %cst_148 = arith.constant 0.000000e+00 : f32
    %121 = vector.broadcast %cst_148 : f32 to vector<64x16xf32>
    %122 = arith.maximumf %120, %121 : vector<64x16xf32>
    %cst_149 = arith.constant 0xFF800000 : f32
    %123 = vector.broadcast %cst_149 : f32 to vector<1x9x9x128xf32>
    %c0_150 = arith.constant 0 : index
    %c0_151 = arith.constant 0 : index
    %c0_152 = arith.constant 0 : index
    %c0_153 = arith.constant 0 : index
    %124 = vector.load %arg11[%c0_150, %c0_151, %c0_152, %c0_153] : memref<1x9x9x128xf32, #tpu.memory_space<vmem>>, vector<1x9x9x128xf32>
    tpu.vector_store %arg11[%c0_150, %c0_151, %c0_152, %c0_153], %123 {strides = array<i32>} : memref<1x9x9x128xf32, #tpu.memory_space<vmem>>, vector<1x9x9x128xf32>,
    %c0_154 = arith.constant 0 : index
    %c1_155 = arith.constant 1 : index
    %c1_156 = arith.constant 1 : index
    %c0_157 = arith.constant 0 : index
    %125 = vector.load %arg11[%c0_154, %c1_155, %c1_156, %c0_157] : memref<1x9x9x128xf32, #tpu.memory_space<vmem>>, vector<1x8x8x128xf32>
    tpu.vector_store %arg11[%c0_154, %c1_155, %c1_156, %c0_157], %0 {strides = array<i32>} : memref<1x9x9x128xf32, #tpu.memory_space<vmem>>, vector<1x8x8x128xf32>,
    %c0_158 = arith.constant 0 : index
    %c0_159 = arith.constant 0 : index
    %c0_160 = arith.constant 0 : index
    %c96 = arith.constant 96 : index
    %126 = vector.load %arg11[%c0_158, %c0_159, %c0_160, %c96] : memref<1x9x9x128xf32, #tpu.memory_space<vmem>>, vector<1x8x8x32xf32>
    %c0_161 = arith.constant 0 : index
    %c0_162 = arith.constant 0 : index
    %c1_163 = arith.constant 1 : index
    %c64 = arith.constant 64 : index
    %127 = vector.load %arg11[%c0_161, %c0_162, %c1_163, %c64] : memref<1x9x9x128xf32, #tpu.memory_space<vmem>>, vector<1x8x8x32xf32>
    %128 = arith.maximumf %126, %127 : vector<1x8x8x32xf32>
    %c0_164 = arith.constant 0 : index
    %c0_165 = arith.constant 0 : index
    %c1_166 = arith.constant 1 : index
    %c96_167 = arith.constant 96 : index
    %129 = vector.load %arg11[%c0_164, %c0_165, %c1_166, %c96_167] : memref<1x9x9x128xf32, #tpu.memory_space<vmem>>, vector<1x8x8x32xf32>
    %130 = arith.maximumf %128, %129 : vector<1x8x8x32xf32>
    %c0_168 = arith.constant 0 : index
    %c1_169 = arith.constant 1 : index
    %c0_170 = arith.constant 0 : index
    %c32 = arith.constant 32 : index
    %131 = vector.load %arg11[%c0_168, %c1_169, %c0_170, %c32] : memref<1x9x9x128xf32, #tpu.memory_space<vmem>>, vector<1x8x8x32xf32>
    %132 = arith.maximumf %130, %131 : vector<1x8x8x32xf32>
    %c0_171 = arith.constant 0 : index
    %c1_172 = arith.constant 1 : index
    %c1_173 = arith.constant 1 : index
    %c0_174 = arith.constant 0 : index
    %133 = vector.load %arg11[%c0_171, %c1_172, %c1_173, %c0_174] : memref<1x9x9x128xf32, #tpu.memory_space<vmem>>, vector<1x8x8x32xf32>
    %134 = arith.maximumf %132, %133 : vector<1x8x8x32xf32>
    %c0_175 = arith.constant 0 : index
    %c1_176 = arith.constant 1 : index
    %c1_177 = arith.constant 1 : index
    %c32_178 = arith.constant 32 : index
    %135 = vector.load %arg11[%c0_175, %c1_176, %c1_177, %c32_178] : memref<1x9x9x128xf32, #tpu.memory_space<vmem>>, vector<1x8x8x32xf32>
    %136 = arith.maximumf %134, %135 : vector<1x8x8x32xf32>
    %c0_179 = arith.constant 0 : index
    %c1_180 = arith.constant 1 : index
    %c0_181 = arith.constant 0 : index
    %c96_182 = arith.constant 96 : index
    %137 = vector.load %arg11[%c0_179, %c1_180, %c0_181, %c96_182] : memref<1x9x9x128xf32, #tpu.memory_space<vmem>>, vector<1x8x8x32xf32>
    %138 = arith.maximumf %136, %137 : vector<1x8x8x32xf32>
    %c0_183 = arith.constant 0 : index
    %c1_184 = arith.constant 1 : index
    %c1_185 = arith.constant 1 : index
    %c64_186 = arith.constant 64 : index
    %139 = vector.load %arg11[%c0_183, %c1_184, %c1_185, %c64_186] : memref<1x9x9x128xf32, #tpu.memory_space<vmem>>, vector<1x8x8x32xf32>
    %140 = arith.maximumf %138, %139 : vector<1x8x8x32xf32>
    %c0_187 = arith.constant 0 : index
    %c1_188 = arith.constant 1 : index
    %c1_189 = arith.constant 1 : index
    %c96_190 = arith.constant 96 : index
    %141 = vector.load %arg11[%c0_187, %c1_188, %c1_189, %c96_190] : memref<1x9x9x128xf32, #tpu.memory_space<vmem>>, vector<1x8x8x32xf32>
    %142 = arith.maximumf %140, %141 : vector<1x8x8x32xf32>
    %143 = vector.shape_cast %142 : vector<1x8x8x32xf32> to vector<64x32xf32>
    %144 = tpu.concatenate %48, %122, %143 in 1 : vector<64x32xf32>, vector<64x16xf32>, vector<64x32xf32> -> vector<64x80xf32>
    %145 = vector.shape_cast %144 : vector<64x80xf32> to vector<1x8x8x80xf32>
    %c0_191 = arith.constant 0 : index
    %c0_192 = arith.constant 0 : index
    %c0_193 = arith.constant 0 : index
    %c0_194 = arith.constant 0 : index
    %146 = vector.load %arg8[%c0_191, %c0_192, %c0_193, %c0_194] : memref<1x8x8x80xf32, #tpu.memory_space<vmem>>, vector<1x8x8x80xf32>
    tpu.vector_store %arg8[%c0_191, %c0_192, %c0_193, %c0_194], %145 {strides = array<i32>} : memref<1x8x8x80xf32, #tpu.memory_space<vmem>>, vector<1x8x8x80xf32>,
    return
  }
  func.func @transform_0(%arg0: i32) -> (i32, i32, i32, i32) {
    %c0_i32 = arith.constant 0 : i32
    %c0_i32_0 = arith.constant 0 : i32
    %c0_i32_1 = arith.constant 0 : i32
    %c0_i32_2 = arith.constant 0 : i32
    return %arg0, %c0_i32, %c0_i32_0, %c0_i32_1 : i32, i32, i32, i32
  }
  func.func @transform_1(%arg0: i32) -> (i32, i32) {
    %c0_i32 = arith.constant 0 : i32
    %c0_i32_0 = arith.constant 0 : i32
    %c0_i32_1 = arith.constant 0 : i32
    return %c0_i32, %c0_i32_0 : i32, i32
  }
  func.func @transform_2(%arg0: i32) -> (i32, i32) {
    %c0_i32 = arith.constant 0 : i32
    %c0_i32_0 = arith.constant 0 : i32
    %c0_i32_1 = arith.constant 0 : i32
    return %c0_i32, %c0_i32_0 : i32, i32
  }
  func.func @transform_3(%arg0: i32) -> (i32, i32, i32, i32) {
    %c0_i32 = arith.constant 0 : i32
    %c0_i32_0 = arith.constant 0 : i32
    %c0_i32_1 = arith.constant 0 : i32
    %c0_i32_2 = arith.constant 0 : i32
    %c0_i32_3 = arith.constant 0 : i32
    return %c0_i32, %c0_i32_0, %c0_i32_1, %c0_i32_2 : i32, i32, i32, i32
  }
  func.func @transform_4(%arg0: i32) -> (i32, i32) {
    %c0_i32 = arith.constant 0 : i32
    %c0_i32_0 = arith.constant 0 : i32
    %c0_i32_1 = arith.constant 0 : i32
    return %c0_i32, %c0_i32_0 : i32, i32
  }
  func.func @transform_5(%arg0: i32) -> (i32, i32, i32, i32) {
    %c0_i32 = arith.constant 0 : i32
    %c0_i32_0 = arith.constant 0 : i32
    %c0_i32_1 = arith.constant 0 : i32
    %c0_i32_2 = arith.constant 0 : i32
    %c0_i32_3 = arith.constant 0 : i32
    return %c0_i32, %c0_i32_0, %c0_i32_1, %c0_i32_2 : i32, i32, i32, i32
  }
  func.func @transform_6(%arg0: i32) -> (i32, i32) {
    %c0_i32 = arith.constant 0 : i32
    %c0_i32_0 = arith.constant 0 : i32
    %c0_i32_1 = arith.constant 0 : i32
    return %c0_i32, %c0_i32_0 : i32, i32
  }
  func.func @transform_7(%arg0: i32) -> (i32, i32, i32, i32) {
    %c0_i32 = arith.constant 0 : i32
    %c0_i32_0 = arith.constant 0 : i32
    %c0_i32_1 = arith.constant 0 : i32
    %c0_i32_2 = arith.constant 0 : i32
    return %arg0, %c0_i32, %c0_i32_0, %c0_i32_1 : i32, i32, i32, i32
  }
}

</mosaic_0001>

<bundles_post_ra>
// kernel: inception_c_forward.1
= control target key start
LH: loop header
LB: loop body
LE: loop exit
PB: predicated region body
PF: predicated region fallthrough
CT: control target
= control target key end

     0   :  { %12 = vsyncpa [#allocation6], 0  ;;  %s4072_s0 = inlined_call_operand.vmem [shape: f32[2,8,8,128], index: 0, kind: input, shape index: {}]   ;;  %s4073_s1 = inlined_call_operand.vmem [shape: bf16[128,96], index: 1, kind: input, shape index: {}]   ;;  %s4074_s2 = inlined_call_operand.vmem [shape: f32[1,96], index: 2, kind: input, shape index: {}]   ;;  %s4075_s3 = inlined_call_operand.vmem [shape: bf16[2,2,64,32], index: 3, kind: input, shape index: {}]   ;;  %s4076_s4 = inlined_call_operand.vmem [shape: f32[1,32], index: 4, kind: input, shape index: {}]   ;;  %s4077_s5 = inlined_call_operand.vmem [shape: bf16[3,3,32,16], index: 5, kind: input, shape index: {}]   ;;  %s4078_s6 = inlined_call_operand.vmem [shape: f32[1,16], index: 6, kind: input, shape index: {}]   ;;  %s4079_s7 = inlined_call_operand.hbm [shape: f32[2,8,8,80], index: 7, kind: output, shape index: {}]  }
   0x1   :  { %14 = vsyncpa [#allocation6 + $0x1], 0  ;;  %s3275_s24 = smov 0   ;;  %s3277_s25 = smov 0  }
   0x2   :  { %s3279_s26 = smov 0   ;;  %s3281_s27 = smov 0  }
   0x3 LB: > { %s3296_s28 = sadd.s32 4294967295, %s3224_s27   ;;  %s2518_s29 = sadd.s32 4294967294, %s3224_s27   ;;  %s3224_s27 = sphi %s3281_s27, %s4085_s27   ;;  %s3220_s26 = sphi %s3279_s26, %s4084_s26   ;;  %s3216_s25 = sphi %s3277_s25, %s4083_s25   ;;  %s3212_s24 = sphi %s3275_s24, %s4082_s24  }
   0x4   : > { %s3300_s30 = sadd.s32 1, %s3224_s27   ;;  %s179_s8 = sadd.s32 1, %s3220_s26 }
   0x5   : > { %s176_s9 = ssub.s32 %s3224_s27, %s3300_s30  ;;  %p189_p0 = scmp.ne.s32.totalorder %s3220_s26, %s3216_s25 }
   0x6   : > { %p177_p1 = scmp.eq.s32.totalorder %s176_s9, 0  ;;  %p190_p2 = scmp.eq.s32.totalorder %s3296_s28, 1 }
   0x7   : > { %p195_p3 = scmp.ne.s32.totalorder %s3216_s25, %s3212_s24  ;;  %p196_p4 = scmp.eq.s32.totalorder %s2518_s29, 1 }
   0x8   : > { %s3311_s10 = scalar_select %p177_p1, %s3220_s26, %s179_s8  }
   0x9   : > { %p3313_p5 = por %p190_p2, %p189_p0  ;;  %p3317_p6 = por %p196_p4, %p195_p3 }
   0xa   : > { %p2521_p7 = scmp.ge.s32.totalorder %s3224_s27, 1  ;;  %p240_p8 = scmp.lt.s32.totalorder %s3224_s27, 3 }
   0xc   : > { %p241_p9 = pnand %p2521_p7, %p240_p8 }
   0xd   : > { %v3114_v0 = vld [vmem:[%s4073_s1] sm:$0xff] (!%p241_p9)   ;;  %p272_p10 = scmp.lt.s32.totalorder (!%p241_p9), %s3296_s28, 1  ;;  %v3115_v1 = vld [vmem:[%s4073_s1 + $0x8] sm:$0xff] (!%p241_p9)   ;;  %v3226_v2 = vmov (!%p241_p9), -inf   ;;  %v3116_v3 = vld [vmem:[%s4073_s1 + $0x10] sm:$0xff] (!%p241_p9)   ;;  %vm434_vm0 = vcmask (!%p241_p9), 523264  }
   0xe   : > { %244 = sbr.rel (%p241_p9) target bundleno = 872 (0x368), region = 48  ;;  %2783 = vmatprep.subr.bf16.mxu1 (!%p241_p9), %v3114_v0  ;;  %2087 = vst [vmem:[#allocation4 + $0x10] sm:$0xff] (!%p241_p9), %v3226_v2  ;;  %2088 = vst [vmem:[#allocation4 + $0x18] sm:$0x1] (!%p241_p9), %v3226_v2  ;;  %v3117_v4 = vld [vmem:[%s4073_s1 + $0x18] sm:$0xff] (!%p241_p9)   ;;  %v3118_v12 = vld [vmem:[%s4073_s1 + $0x20] sm:$0xff] (!%p241_p9)  }
   0xf   : > { %2089 = vst [vmem:[#allocation4 + $0x20] sm:$0xff] (!%p241_p9), %v3226_v2  ;;  %2090 = vst [vmem:[#allocation4 + $0x28] sm:$0x1] (!%p241_p9), %v3226_v2  ;;  %2784 = vmatpush3.bf16.msra.mxu1 (!%p241_p9), %v3114_v0  ;;  %v3119_v15 = vld [vmem:[%s4073_s1 + $0x28] sm:$0xff] (!%p241_p9)   ;;  %v3120_v16 = vld [vmem:[%s4073_s1 + $0x30] sm:$0xff] (!%p241_p9)   ;;  %vm436_vm1 = vcmask (!%p241_p9), 516096  }
  0x10   : > { %2085 = vst [vmem:[#allocation4] sm:$0xff] (!%p241_p9), %v3226_v2  ;;  %2086 = vst [vmem:[#allocation4 + $0x8] sm:$0x1] (!%p241_p9), %v3226_v2  ;;  %2785 = vmatprep.subr.bf16.mxu1 (!%p241_p9), %v3115_v1  ;;  %v3121_v17 = vld [vmem:[%s4073_s1 + $0x38] sm:$0xff] (!%p241_p9)   ;;  %v3122_v21 = vld [vmem:[%s4075_s3 + $0x20] sm:$0xff] (!%p241_p9)   ;;  %v3227_v22 = vmov (!%p241_p9), 0.0  }
  0x11   : > { %2091 = vst [vmem:[#allocation4 + $0x30] sm:$0xff] (!%p241_p9), %v3226_v2  ;;  %2092 = vst [vmem:[#allocation4 + $0x38] sm:$0x1] (!%p241_p9), %v3226_v2  ;;  %v3123_v23 = vld [vmem:[%s4075_s3 + $0x28] sm:$0xff] (!%p241_p9)   ;;  %v3124_v24 = vld [vmem:[%s4075_s3 + $0x30] sm:$0xff] (!%p241_p9)   ;;  %vm989_vm2 = vcmask (!%p241_p9), 261120  }
  0x12   : > { %2093 = vst [vmem:[#allocation4 + $0x40] sm:$0xff] (!%p241_p9), %v3226_v2  ;;  %2094 = vst [vmem:[#allocation4 + $0x48] sm:$0x1] (!%p241_p9), %v3226_v2  ;;  %v3125_v25 = vld [vmem:[%s4075_s3 + $0x38] sm:$0xff] (!%p241_p9)   ;;  %v3413_v26 = vld [vmem:[%s4075_s3] sm:$0xff] (!%p241_p9)   ;;  %vm991_vm3 = vcmask (!%p241_p9), 254976  }
  0x13   : > { %2095 = vst [vmem:[#allocation4 + $0x50] sm:$0xff] (!%p241_p9), %v3226_v2  ;;  %2096 = vst [vmem:[#allocation4 + $0x58] sm:$0x1] (!%p241_p9), %v3226_v2  ;;  %2786 = vmatpush3.bf16.msra.mxu1 (!%p241_p9), %v3115_v1  ;;  %v3138_v27 = vld [vmem:[%s4077_s5] sm:$0xff] (!%p241_p9)   ;;  %v3140_v32 = vld [vmem:[%s4077_s5 + $0x8] sm:$0xff] (!%p241_p9)   ;;  %s3228_s22 = smov (!%p241_p9), 64  }
  0x14   : > { %2097 = vst [vmem:[#allocation4 + $0x60] sm:$0xff] (!%p241_p9), %v3226_v2  ;;  %2098 = vst [vmem:[#allocation4 + $0x68] sm:$0x1] (!%p241_p9), %v3226_v2  ;;  %2787 = vmatprep.subr.bf16.mxu1 (!%p241_p9), %v3116_v3  ;;  %v2525_v28 = vld [vmem:[%s4074_s2] ss:$0 sm:$0xff] (!%p241_p9)  ;;  %2883 = vmatprep.subr.bf16.mxu0 (!%p241_p9), %v3138_v27  ;;  %v3127_v61 = vld [vmem:[%s4075_s3 + $0x8] sm:$0xff] (!%p241_p9)  }
  0x15   : > { %s273_s17 = scalar_select %p272_p10, %s3296_s28, 1  ;;  %2099 = vst [vmem:[#allocation4 + $0x70] sm:$0xff] %v3226_v2  ;;  %2100 = vst [vmem:[#allocation4 + $0x78] sm:$0x1] %v3226_v2  ;;  %2884 = vmatpush3.bf16.msra.mxu0 %v3138_v27  ;;  %v3450_v41 = vld [vmem:[%s4077_s5 + $0x20] sm:$0xff]   ;;  %v3128_v62 = vld [vmem:[%s4075_s3 + $0x10] sm:$0xff]  }
  0x16   : > { %2101 = vst [vmem:[#allocation4 + $0x80] sm:$0xff] %v3226_v2  ;;  %2102 = vst [vmem:[#allocation4 + $0x88] sm:$0x1] %v3226_v2  ;;  %2885 = vmatprep.subr.bf16.mxu0 %v3140_v32  ;;  %s3229_s8 = smov 32   ;;  %s3230_s9 = smov 96   ;;  %vm2424_vm4 = vcmask 392192  }
  0x17   : > { %s2683_s20 = sshll.u32 %s273_s17, 6  ;;  %2788 = vmatpush3.bf16.msra.mxu1 %v3116_v3  ;;  %442 = vst.msk [vmem:[#allocation2 + $0x30] sm:$0xff] %vm434_vm0, %v3227_v22  ;;  %435 = vst.msk [vmem:[#allocation2] sm:$0xff] %vm434_vm0, %v3227_v22  ;;  %s3231_s13 = smov 80   ;;  %vm2433_vm5 = vcmask 654336  }
  0x18   : > { %s276_s23 = scalar_lea.vmem %s4072_s0, %s2683_s20  ;;  %2789 = vmatprep.subr.bf16.mxu1 %v3117_v4  ;;  %443 = vst.msk [vmem:[#allocation2 + $0x38] sm:$0x1] %vm436_vm1, %v3227_v22  ;;  %437 = vst.msk [vmem:[#allocation2 + $0x8] sm:$0x1] %vm436_vm1, %v3227_v22  ;;  %s269_s18 = sand.u32 1, %s3216_s25  }
  0x19   : > { %v3340_v5 = vld [vmem:[%s276_s23] sm:$0xff]  ;;  %v3342_v6 = vld [vmem:[%s276_s23 + $0x8] sm:$0xff]  ;;  %v3344_v7 = vld [vmem:[%s276_s23 + $0x10] sm:$0xff]  ;;  %438 = vst.msk [vmem:[#allocation2 + $0x10] sm:$0xff] %vm434_vm0, %v3227_v22  ;;  %2886 = vmatpush3.bf16.msra.mxu0 %v3140_v32  ;;  %s2684_s20 = sshll.u32 %s3296_s28, 10  ;;  %s4031_s29 = scalar_lea.sflag [#allocation6], %s269_s18 }
  0x1a   : > { %v286_v8 = vpack.c.bf16 %v3342_v6, %v3340_v5  ;;  %2104 = vst [vmem:[#allocation4 + $0x11] sm:$0xff] %v3340_v5  ;;  %2105 = vst [vmem:[#allocation4 + $0x21] sm:$0xff] %v3342_v6  ;;  %v3350_v9 = vld [vmem:[%s276_s23 + $0x18] sm:$0xff]  ;;  %v3353_v10 = vld [vmem:[%s276_s23 + $0x20] sm:$0xff]  ;;  %2895 = vmatprep.subr.bf16.mxu0 %v3450_v41 }
  0x1b   : > { %2106 = vst [vmem:[#allocation4 + $0x31] sm:$0xff] %v3344_v7  ;;  %v3355_v11 = vld [vmem:[%s276_s23 + $0x28] sm:$0xff]  ;;  %2107 = vst [vmem:[#allocation4 + $0x41] sm:$0xff] %v3350_v9  ;;  %v3363_v13 = vld [vmem:[%s276_s23 + $0x30] sm:$0xff]  ;;  %2790 = vmatpush3.bf16.msra.mxu1 %v3117_v4  ;;  %v287_v18 = vpack.c.bf16 %v3350_v9, %v3344_v7 }
  0x1c   : > { %2108 = vst [vmem:[#allocation4 + $0x51] sm:$0xff] %v3353_v10  ;;  %2109 = vst [vmem:[#allocation4 + $0x61] sm:$0xff] %v3355_v11  ;;  %v285_v14 = vld [vmem:[%s276_s23 + $0x38] sm:$0xff]  ;;  %2799 = vmatprep.mubr.bf16.mxu1 %v286_v8  ;;  %2791 = vmatprep.subr.bf16.mxu1 %v3118_v12  ;;  %v288_v19 = vpack.c.bf16 %v3355_v11, %v3353_v10  ;;  %v3135_v32 = vld [vmem:[%s4075_s3 + $0x68] sm:$0xff]   ;;  %s4019_s23 = scalar_lea.hbm %s4079_s7, %s2684_s20 }
  0x1d   : > { %2110 = vst [vmem:[#allocation4 + $0x71] sm:$0xff] %v3363_v13  ;;  %2111 = vst [vmem:[#allocation4 + $0x81] sm:$0xff] %v285_v14  ;;  %v289_v20 = vpack.c.bf16 %v285_v14, %v3363_v13  ;;  %v3129_v14 = vld [vmem:[%s4075_s3 + $0x18] sm:$0xff]  }
  0x1e   : > { %439 = vst.msk [vmem:[#allocation2 + $0x18] sm:$0x1] %vm436_vm1, %v3227_v22  ;;  %441 = vst.msk [vmem:[#allocation2 + $0x28] sm:$0x1] %vm436_vm1, %v3227_v22  ;;  %v463_v2 = vld [vmem:[#allocation2] sm:$0xff] }
  0x1f   : > { %2792 = vmatpush3.bf16.msra.mxu1 %v3118_v12  ;;  %440 = vst.msk [vmem:[#allocation2 + $0x20] sm:$0xff] %vm434_vm0, %v3227_v22  ;;  %444 = vst.msk [vmem:[#allocation2 + $0x40] sm:$0xff] %vm434_vm0, %v3227_v22  ;;  %v483_v51 = vld [vmem:[#allocation2 + $0x1] sm:$0xff] }
  0x20   : > { %2793 = vmatprep.subr.bf16.mxu1 %v3119_v15  ;;  %445 = vst.msk [vmem:[#allocation2 + $0x48] sm:$0x1] %vm436_vm1, %v3227_v22  ;;  %447 = vst.msk [vmem:[#allocation2 + $0x58] sm:$0x1] %vm436_vm1, %v3227_v22 }
  0x21   : > { %446 = vst.msk [vmem:[#allocation2 + $0x50] sm:$0xff] %vm434_vm0, %v3227_v22  ;;  %448 = vst.msk [vmem:[#allocation2 + $0x60] sm:$0xff] %vm434_vm0, %v3227_v22 }
  0x22   : > { %449 = vst.msk [vmem:[#allocation2 + $0x68] sm:$0x1] %vm436_vm1, %v3227_v22  ;;  %451 = vst.msk [vmem:[#allocation2 + $0x78] sm:$0x1] %vm436_vm1, %v3227_v22 }
  0x23   : > { %2794 = vmatpush3.bf16.msra.mxu1 %v3119_v15  ;;  %450 = vst.msk [vmem:[#allocation2 + $0x70] sm:$0xff] %vm434_vm0, %v3227_v22  ;;  %452 = vst.msk [vmem:[#allocation2 + $0x80] sm:$0xff] %vm434_vm0, %v3227_v22 }
  0x24   : > { %2795 = vmatprep.subr.bf16.mxu1 %v3120_v16  ;;  %453 = vst.msk [vmem:[#allocation2 + $0x88] sm:$0x1] %vm436_vm1, %v3227_v22 }
  0x25   : > { %997 = vst.msk [vmem:[#allocation3 + $0x30] sm:$0xff] %vm989_vm2, %v3227_v22  ;;  %990 = vst.msk [vmem:[#allocation3] sm:$0xff] %vm989_vm2, %v3227_v22 }
  0x26   : > { %998 = vst.msk [vmem:[#allocation3 + $0x38] sm:$0x3] %vm991_vm3, %v3227_v22  ;;  %992 = vst.msk [vmem:[#allocation3 + $0x8] sm:$0x3] %vm991_vm3, %v3227_v22 }
  0x27   : > { %2796 = vmatpush3.bf16.msra.mxu1 %v3120_v16  ;;  %993 = vst.msk [vmem:[#allocation3 + $0x10] sm:$0xff] %vm989_vm2, %v3227_v22  ;;  %995 = vst.msk [vmem:[#allocation3 + $0x20] sm:$0xff] %vm989_vm2, %v3227_v22  ;;  %v3130_v16 = vld [vmem:[%s4075_s3 + $0x40] sm:$0xff]  }
  0x28   : > { %2797 = vmatprep.subr.bf16.mxu1 %v3121_v17  ;;  %994 = vst.msk [vmem:[#allocation3 + $0x18] sm:$0x3] %vm991_vm3, %v3227_v22  ;;  %996 = vst.msk [vmem:[#allocation3 + $0x28] sm:$0x3] %vm991_vm3, %v3227_v22 }
  0x29   : > { %999 = vst.msk [vmem:[#allocation3 + $0x40] sm:$0xff] %vm989_vm2, %v3227_v22  ;;  %1001 = vst.msk [vmem:[#allocation3 + $0x50] sm:$0xff] %vm989_vm2, %v3227_v22 }
  0x2a   : > { %1000 = vst.msk [vmem:[#allocation3 + $0x48] sm:$0x3] %vm991_vm3, %v3227_v22  ;;  %1002 = vst.msk [vmem:[#allocation3 + $0x58] sm:$0x3] %vm991_vm3, %v3227_v22 }
  0x2b   : > { %2798 = vmatpush3.bf16.msra.mxu1 %v3121_v17  ;;  %1003 = vst.msk [vmem:[#allocation3 + $0x60] sm:$0xff] %vm989_vm2, %v3227_v22  ;;  %1005 = vst.msk [vmem:[#allocation3 + $0x70] sm:$0xff] %vm989_vm2, %v3227_v22 }
  0x2c   : > { %2807 = vmatprep.subr.bf16.mxu1 %v3122_v21  ;;  %1004 = vst.msk [vmem:[#allocation3 + $0x68] sm:$0x3] %vm991_vm3, %v3227_v22  ;;  %1006 = vst.msk [vmem:[#allocation3 + $0x78] sm:$0x3] %vm991_vm3, %v3227_v22 }
  0x2d   : > { %1007 = vst.msk [vmem:[#allocation3 + $0x80] sm:$0xff] %vm989_vm2, %v3227_v22  ;;  %1009 = vst.msk [vmem:[#allocation3 + $0x90] sm:$0xff] %vm989_vm2, %v3227_v22 }
  0x2e   : > { %2800 = vmatmul.mubr.bf16.vlgmr.msra.gmra.mrb[0].mxu1 %v287_v18  ;;  %1008 = vst.msk [vmem:[#allocation3 + $0x88] sm:$0x3] %vm991_vm3, %v3227_v22  ;;  %1010 = vst.msk [vmem:[#allocation3 + $0x98] sm:$0x3] %vm991_vm3, %v3227_v22  ;;  %v3131_v22 = vld [vmem:[%s4075_s3 + $0x48] sm:$0xff]  }
  0x2f   : > { %2803 = vmatprep.mubr.bf16.mxu1 %v288_v19  ;;  %2808 = vmatpush3.bf16.msra.mxu1 %v3122_v21 }
  0x30   : > { %2809 = vmatprep.subr.bf16.mxu1 %v3123_v23 }
  0x33   : > { %2810 = vmatpush3.bf16.msra.mxu1 %v3123_v23 }
  0x34   : > { %2811 = vmatprep.subr.bf16.mxu1 %v3124_v24 }
  0x36   : > { %2804 = vmatmul.mubr.bf16.gmra.mrb[4].mxu1 %v289_v20 }
  0x37   : > { %2812 = vmatpush3.bf16.msra.mxu1 %v3124_v24  ;;  %v3132_v24 = vld [vmem:[%s4075_s3 + $0x50] sm:$0xff]  }
  0x38   : > { %2813 = vmatprep.subr.bf16.mxu1 %v3125_v25 }
  0x3b   : > { %2814 = vmatpush3.bf16.msra.mxu1 %v3125_v25 }
  0x3c   : > { %2823 = vmatprep.subr.bf16.mxu1 %v3413_v26 }
 0x101   : > { %v2801_v29 = vpop.f32.mrb[0].mxu1 }
 0x102   : > { %v404_v30 = vadd.f32 %v2801_v29, %v2525_v28  ;;  %v395_v31 = vpop.f32.mrb[1].mxu1 }
 0x103   : > { %v396_v33 = vadd.f32 %v2525_v28, %v395_v31  ;;  %v2802_v34 = vpop.f32.mrb[2].mxu1 }
 0x104   : > { %v428_v35 = vmax.f32 %v404_v30, 0.0  ;;  %v407_v36 = vadd.f32 %v2802_v34, %v2525_v28  ;;  %v398_v37 = vpop.f32.mrb[3].mxu1  ;;  %v3134_v30 = vld [vmem:[%s4075_s3 + $0x60] sm:$0xff]   ;;  %v3136_v34 = vld [vmem:[%s4075_s3 + $0x70] sm:$0xff]  }
 0x105   : > { %v426_v38 = vmax.f32 %v396_v33, 0.0  ;;  %v399_v39 = vadd.f32 %v2525_v28, %v398_v37  ;;  %v3137_v37 = vld [vmem:[%s4075_s3 + $0x78] sm:$0xff]  }
 0x106   : > { %457 = vst.msk [vmem:[#allocation2 + $0x31] sm:$0xff] %vm434_vm0, %v428_v35  ;;  %v429_v40 = vmax.f32 %v407_v36, 0.0  ;;  %1023 = vrot.lane.b32.xlu1 %v428_v35, %s3228_s22 }
 0x107   : > { %455 = vst.msk [vmem:[#allocation2 + $0x11] sm:$0xff] %vm434_vm0, %v426_v38  ;;  %v427_v42 = vmax.f32 %v399_v39, 0.0  ;;  %1019 = vrot.lane.b32.xlu0 %v426_v38, %s3228_s22  ;;  %v3139_v39 = vld [vmem:[%s4077_s5 + $0x10] sm:$0xff]  }
 0x108   : > { %458 = vst.msk [vmem:[#allocation2 + $0x41] sm:$0xff] %vm434_vm0, %v429_v40 }
 0x109   : > { %456 = vst.msk [vmem:[#allocation2 + $0x21] sm:$0xff] %vm434_vm0, %v427_v42  ;;  %v2805_v43 = vpop.f32.mrb[4].mxu1 }
 0x10a   : > { %v420_v44 = vadd.f32 %v2805_v43, %v2525_v28  ;;  %1025 = vrot.lane.b32.xlu1 %v429_v40, %s3228_s22  ;;  %v411_v45 = vpop.f32.mrb[5].mxu1 }
 0x10b   : > { %v412_v46 = vadd.f32 %v2525_v28, %v411_v45  ;;  %v2806_v47 = vpop.f32.mrb[6].mxu1  ;;  %1021 = vrot.lane.b32.xlu0 %v427_v42, %s3228_s22  ;;  %v3141_v42 = vld [vmem:[%s4077_s5 + $0x18] sm:$0xff]  }
 0x10c   : > { %v432_v48 = vmax.f32 %v420_v44, 0.0  ;;  %v423_v49 = vadd.f32 %v2806_v47, %v2525_v28  ;;  %v414_v50 = vpop.f32.mrb[7].mxu1  ;;  %v3571_v47 = vld [vmem:[#allocation4 + $0x10] sm:$0xff] }
 0x10d   : > { %v430_v52 = vmax.f32 %v412_v46, 0.0  ;;  %v415_v53 = vadd.f32 %v2525_v28, %v414_v50  ;;  %v3468_v59 = vld [vmem:[#allocation2 + $0x31] sm:$0xff]  ;;  %v3595_v50 = vld [vmem:[#allocation4 + $0x70] sm:$0xff] }
 0x10e   : > { %461 = vst.msk [vmem:[#allocation2 + $0x71] sm:$0xff] %vm434_vm0, %v432_v48  ;;  %v433_v54 = vmax.f32 %v423_v49, 0.0  ;;  %v3460_v55 = vld [vmem:[#allocation2 + $0x11] sm:$0xff] }
 0x10f   : > { %459 = vst.msk [vmem:[#allocation2 + $0x51] sm:$0xff] %vm434_vm0, %v430_v52  ;;  %v431_v56 = vmax.f32 %v415_v53, 0.0  ;;  %1027 = vrot.lane.b32.xlu0 %v430_v52, %s3228_s22  ;;  %v491_v57 = vpack.c.bf16 %v3460_v55, %v483_v51  ;;  %v3485_v63 = vld [vmem:[#allocation2 + $0x41] sm:$0xff]  ;;  %v464_v3 = vld [vmem:[#allocation2 + $0x10] sm:$0xff]  ;;  %v3133_v28 = vld [vmem:[%s4075_s3 + $0x58] sm:$0xff]  }
 0x110   : > { %462 = vst.msk [vmem:[#allocation2 + $0x81] sm:$0xff] %vm434_vm0, %v433_v54  ;;  %v3466_v58 = vld [vmem:[#allocation2 + $0x21] sm:$0xff]  ;;  %v471_v15 = vpack.c.bf16 %v464_v3, %v463_v2  ;;  %v466_v19 = vld [vmem:[#allocation2 + $0x30] sm:$0xff]  ;;  %v845_v40 = vpack.c.bf16 %v3485_v63, %v3468_v59 }
 0x111   : > { %460 = vst.msk [vmem:[#allocation2 + $0x61] sm:$0xff] %vm434_vm0, %v431_v56  ;;  %1029 = vrot.lane.b32.xlu1 %v431_v56, %s3228_s22  ;;  %2815 = vmatprep.mubr.msk.bf16.mxu1 %vm434_vm0, %v491_v57  ;;  %v492_v60 = vpack.c.bf16 %v3468_v59, %v3466_v58  ;;  %v465_v17 = vld [vmem:[#allocation2 + $0x20] sm:$0xff]  ;;  %v844_v38 = vpack.c.bf16 %v3466_v58, %v3460_v55  ;;  %v3551_v46 = vld [vmem:[#allocation4 + $0x1] sm:$0xff] }
 0x112   : > { %v472_v20 = vpack.c.bf16 %v466_v19, %v465_v17  ;;  %v467_v21 = vld [vmem:[#allocation2 + $0x40] sm:$0xff]  ;;  %v714_v29 = vpack.c.bf16 %v465_v17, %v464_v3  ;;  %v3593_v49 = vld [vmem:[#allocation4 + $0x80] sm:$0xff] }
 0x113   : > { %1031 = vrot.lane.b32.xlu0 %v432_v48, %s3228_s22  ;;  %2816 = vmatmul.mubr.msk.bf16.vlgmr.msra.gmra.mrb[8].mxu1 %vm434_vm0, %v492_v60  ;;  %v715_v31 = vpack.c.bf16 %v467_v21, %v466_v19  ;;  %v3603_v52 = vld [vmem:[#allocation4 + $0x21] sm:$0xff]  ;;  %v3605_v53 = vld [vmem:[#allocation4 + $0x11] sm:$0xff] }
 0x114   : > { %2824 = vmatpush3.bf16.msra.mxu1 %v3413_v26  ;;  %v1068_v56 = vld [vmem:[#allocation3 + $0x1] sm:$0xff] }
 0x115   : > { %1033 = vrot.lane.b32.xlu1 %v433_v54, %s3228_s22  ;;  %2825 = vmatprep.subr.bf16.mxu1 %v3127_v61  ;;  %v3493_v8 = vld [vmem:[#allocation2 + $0x71] sm:$0xff] }
 0x116   : > { %v3487_v0 = vld [vmem:[#allocation2 + $0x51] sm:$0xff] }
 0x117   : > { %v493_v1 = vpack.c.bf16 %v3487_v0, %v3485_v63  ;;  %v468_v18 = vld [vmem:[#allocation2 + $0x50] sm:$0xff]  ;;  %v713_v35 = vld [vmem:[#allocation2 + $0x80] sm:$0xff]  ;;  %2136 = vrot.lane.b32.xlu0 %v3551_v46, %s3229_s8 }
 0x118   : > { %2826 = vmatpush3.bf16.msra.mxu1 %v3127_v61  ;;  %v3491_v4 = vld [vmem:[#allocation2 + $0x61] sm:$0xff]  ;;  %v473_v23 = vpack.c.bf16 %v468_v18, %v467_v21  ;;  %v470_v26 = vld [vmem:[#allocation2 + $0x70] sm:$0xff] }
 0x119   : > { %2819 = vmatprep.mubr.msk.bf16.mxu1 %vm434_vm0, %v493_v1  ;;  %v494_v12 = vpack.c.bf16 %v3493_v8, %v3491_v4  ;;  %2827 = vmatprep.subr.bf16.mxu1 %v3128_v62  ;;  %v469_v25 = vld [vmem:[#allocation2 + $0x60] sm:$0xff]  ;;  %v717_v36 = vpack.c.bf16 %v713_v35, %v470_v26  ;;  %v846_v43 = vpack.c.bf16 %v3491_v4, %v3487_v0  ;;  %v1052_v57 = vld [vmem:[#allocation3] sm:$0xff] }
 0x11a   : > { %v474_v27 = vpack.c.bf16 %v470_v26, %v469_v25  ;;  %v716_v33 = vpack.c.bf16 %v469_v25, %v468_v18  ;;  %v843_v44 = vld [vmem:[#allocation2 + $0x81] sm:$0xff]  ;;  %2138 = vrot.lane.b32.xlu1 %v3340_v5, %s3229_s8  ;;  %v3569_v5 = vld [vmem:[#allocation4 + $0x20] sm:$0xff] }
 0x11b   : > { %2820 = vmatmul.mubr.msk.bf16.gmra.mrb[12].mxu1 %vm434_vm0, %v494_v12  ;;  %v847_v45 = vpack.c.bf16 %v843_v44, %v3493_v8  ;;  %2140 = vrot.lane.b32.xlu0 %v3342_v6, %s3229_s8  ;;  %v3577_v6 = vld [vmem:[#allocation4 + $0x40] sm:$0xff]  ;;  %v3622_v0 = vld [vmem:[#allocation4 + $0x31] sm:$0xff] }
 0x11c   : > { %2828 = vmatpush3.bf16.msra.mxu1 %v3128_v62  ;;  %2831 = vmatprep.mubr.msk.bf16.mxu1 %vm434_vm0, %v471_v15  ;;  %v3620_v63 = vld [vmem:[#allocation4 + $0x41] sm:$0xff]  ;;  %v3635_v4 = vld [vmem:[#allocation4 + $0x51] sm:$0xff] }
 0x11d   : > { %2829 = vmatprep.subr.bf16.mxu1 %v3129_v14  ;;  %v3633_v3 = vld [vmem:[#allocation4 + $0x61] sm:$0xff]  ;;  %v3143_v18 = vld [vmem:[%s4077_s5 + $0x28] sm:$0xff]  }
 0x11e   : > { %2142 = vrot.lane.b32.xlu1 %v3344_v7, %s3229_s8  ;;  %v3579_v7 = vld [vmem:[#allocation4 + $0x30] sm:$0xff]  ;;  %v3666_v21 = vld [vmem:[#allocation4 + $0x81] sm:$0xff] }
 0x11f   : > { %2144 = vrot.lane.b32.xlu0 %v3350_v9, %s3229_s8  ;;  %v3585_v9 = vld [vmem:[#allocation4 + $0x60] sm:$0xff] }
 0x120   : > { %2830 = vmatpush3.bf16.msra.mxu1 %v3129_v14 }
 0x121   : > { %2839 = vmatprep.subr.bf16.mxu1 %v3130_v16 }
 0x122   : > { %2146 = vrot.lane.b32.xlu1 %v3353_v10, %s3229_s8  ;;  %v3587_v10 = vld [vmem:[#allocation4 + $0x50] sm:$0xff] }
 0x123   : > { %2832 = vmatmul.mubr.msk.bf16.vlgmr.msra.gmra.mrb[8].mxu1 %vm434_vm0, %v472_v20  ;;  %2148 = vrot.lane.b32.xlu0 %v3355_v11, %s3229_s8 }
 0x124   : > { %2835 = vmatprep.mubr.msk.bf16.mxu1 %vm434_vm0, %v473_v23  ;;  %2840 = vmatpush3.bf16.msra.mxu1 %v3130_v16 }
 0x125   : > { %2841 = vmatprep.subr.bf16.mxu1 %v3131_v22 }
 0x126   : > { %2150 = vrot.lane.b32.xlu1 %v3363_v13, %s3229_s8 }
 0x127   : > { %2192 = vrot.lane.b32.xlu0 %v3571_v47, %s3228_s22 }
 0x128   : > { %2842 = vmatpush3.bf16.msra.mxu1 %v3131_v22  ;;  %v3668_v22 = vld [vmem:[#allocation4 + $0x71] sm:$0xff] }
 0x129   : > { %2843 = vmatprep.subr.bf16.mxu1 %v3132_v24 }
 0x12a   : > { %2194 = vrot.lane.b32.xlu1 %v3569_v5, %s3228_s22 }
 0x12b   : > { %2836 = vmatmul.mubr.msk.bf16.gmra.mrb[12].mxu1 %vm434_vm0, %v474_v27  ;;  %2196 = vrot.lane.b32.xlu0 %v3579_v7, %s3228_s22 }
 0x12c   : > { %2844 = vmatpush3.bf16.msra.mxu1 %v3132_v24  ;;  %2847 = vmatprep.mubr.msk.bf16.mxu1 %vm434_vm0, %v714_v29  ;;  %v1263_v29 = vld [vmem:[#allocation3 + $0x2] sm:$0xff] }
 0x12d   : > { %2845 = vmatprep.subr.bf16.mxu1 %v3133_v28 }
 0x12e   : > { %2198 = vrot.lane.b32.xlu1 %v3577_v6, %s3228_s22 }
 0x12f   : > { %2200 = vrot.lane.b32.xlu0 %v3587_v10, %s3228_s22 }
 0x130   : > { %2846 = vmatpush3.bf16.msra.mxu1 %v3133_v28  ;;  %v3144_v28 = vld [vmem:[%s4077_s5 + $0x30] sm:$0xff]  }
 0x131   : > { %2855 = vmatprep.subr.bf16.mxu1 %v3134_v30 }
 0x132   : > { %2202 = vrot.lane.b32.xlu1 %v3585_v9, %s3228_s22 }
 0x133   : > { %2848 = vmatmul.mubr.msk.bf16.vlgmr.msra.gmra.mrb[8].mxu1 %vm434_vm0, %v715_v31  ;;  %2204 = vrot.lane.b32.xlu0 %v3595_v50, %s3228_s22 }
 0x134   : > { %2851 = vmatprep.mubr.msk.bf16.mxu1 %vm434_vm0, %v716_v33  ;;  %2856 = vmatpush3.bf16.msra.mxu1 %v3134_v30 }
 0x135   : > { %2857 = vmatprep.subr.bf16.mxu1 %v3135_v32 }
 0x136   : > { %2206 = vrot.lane.b32.xlu1 %v3593_v49, %s3228_s22 }
 0x137   : > { %2240 = vrot.lane.b32.xlu0 %v3605_v53, %s3230_s9 }
 0x138   : > { %2858 = vmatpush3.bf16.msra.mxu1 %v3135_v32 }
 0x139   : > { %2859 = vmatprep.subr.bf16.mxu1 %v3136_v34 }
 0x13a   : > { %2242 = vrot.lane.b32.xlu1 %v3603_v52, %s3230_s9 }
 0x13b   : > { %2852 = vmatmul.mubr.msk.bf16.gmra.mrb[12].mxu1 %vm434_vm0, %v717_v36  ;;  %2244 = vrot.lane.b32.xlu0 %v3622_v0, %s3230_s9 }
 0x13c   : > { %2860 = vmatpush3.bf16.msra.mxu1 %v3136_v34  ;;  %2863 = vmatprep.mubr.msk.bf16.mxu1 %vm434_vm0, %v844_v38 }
 0x13d   : > { %2861 = vmatprep.subr.bf16.mxu1 %v3137_v37 }
 0x13e   : > { %2246 = vrot.lane.b32.xlu1 %v3620_v63, %s3230_s9 }
 0x13f   : > { %2248 = vrot.lane.b32.xlu0 %v3635_v4, %s3230_s9 }
 0x140   : > { %2862 = vmatpush3.bf16.msra.mxu1 %v3137_v37 }
 0x141   : > { %2871 = vmatprep.subr.bf16.mxu1 %v3139_v39 }
 0x142   : > { %2250 = vrot.lane.b32.xlu1 %v3633_v3, %s3230_s9 }
 0x143   : > { %2864 = vmatmul.mubr.msk.bf16.vlgmr.msra.gmra.mrb[8].mxu1 %vm434_vm0, %v845_v40  ;;  %2252 = vrot.lane.b32.xlu0 %v3668_v22, %s3230_s9 }
 0x144   : > { %2867 = vmatprep.mubr.msk.bf16.mxu1 %vm434_vm0, %v846_v43  ;;  %2872 = vmatpush3.bf16.msra.mxu1 %v3139_v39  ;;  %v3145_v43 = vld [vmem:[%s4077_s5 + $0x38] sm:$0xff]  }
 0x145   : > { %2873 = vmatprep.subr.bf16.mxu1 %v3141_v42 }
 0x146   : > { %2254 = vrot.lane.b32.xlu1 %v3666_v21, %s3230_s9 }
 0x147   : > { %2272 = vrot.lane.b32.xlu0 %v3605_v53, %s3228_s22 }
 0x148   : > { %2874 = vmatpush3.bf16.msra.mxu1 %v3141_v42 }
 0x14a   : > { %2274 = vrot.lane.b32.xlu1 %v3603_v52, %s3228_s22 }
 0x14b   : > { %2868 = vmatmul.mubr.msk.bf16.gmra.mrb[12].mxu1 %vm434_vm0, %v847_v45  ;;  %2276 = vrot.lane.b32.xlu0 %v3622_v0, %s3228_s22  ;;  %v3146_v45 = vld [vmem:[%s4077_s5 + $0x40] sm:$0xff]  }
 0x14e   : > { %2278 = vrot.lane.b32.xlu1 %v3620_v63, %s3228_s22 }
 0x14f   : > { %2280 = vrot.lane.b32.xlu0 %v3635_v4, %s3228_s22 }
 0x152   : > { %2282 = vrot.lane.b32.xlu1 %v3633_v3, %s3228_s22 }
 0x153   : > { %2284 = vrot.lane.b32.xlu0 %v3668_v22, %s3228_s22 }
 0x156   : > { %2286 = vrot.lane.b32.xlu1 %v3666_v21, %s3228_s22 }
 0x157   : > { %2312 = vrot.lane.b32.xlu0 %v3605_v53, %s3229_s8 }
 0x15a   : > { %2314 = vrot.lane.b32.xlu1 %v3603_v52, %s3229_s8 }
 0x15b   : > { %2316 = vrot.lane.b32.xlu0 %v3622_v0, %s3229_s8 }
 0x15e   : > { %2318 = vrot.lane.b32.xlu1 %v3620_v63, %s3229_s8 }
 0x15f   : > { %2320 = vrot.lane.b32.xlu0 %v3635_v4, %s3229_s8 }
 0x162   : > { %2322 = vrot.lane.b32.xlu1 %v3633_v3, %s3229_s8 }
 0x163   : > { %2324 = vrot.lane.b32.xlu0 %v3668_v22, %s3229_s8 }
 0x166   : > { %2326 = vrot.lane.b32.xlu1 %v3666_v21, %s3229_s8 }
 0x178   : > { %v1024_v48 = vpop.permute.xlu1 %1023 }
 0x179   : > { %1046 = vst.msk [vmem:[#allocation3 + $0x31] sm:$0xff] %vm989_vm2, %v1024_v48  ;;  %v1020_v51 = vpop.permute.xlu0 %1019 }
 0x17a   : > { %1044 = vst.msk [vmem:[#allocation3 + $0x11] sm:$0xff] %vm989_vm2, %v1020_v51 }
 0x17c   : > { %v1026_v54 = vpop.permute.xlu1 %1025 }
 0x17d   : > { %1047 = vst.msk [vmem:[#allocation3 + $0x41] sm:$0xff] %vm989_vm2, %v1026_v54  ;;  %v1022_v55 = vpop.permute.xlu0 %1021 }
 0x17e   : > { %1045 = vst.msk [vmem:[#allocation3 + $0x21] sm:$0xff] %vm989_vm2, %v1022_v55 }
 0x180   : > { %v3631_v2 = vld [vmem:[#allocation3 + $0x31] sm:$0xff] }
 0x181   : > { %v1028_v58 = vpop.permute.xlu0 %1027  ;;  %v3613_v59 = vld [vmem:[#allocation3 + $0x11] sm:$0xff] }
 0x182   : > { %v3615_v60 = vld [vmem:[#allocation3 + $0x10] sm:$0xff]  ;;  %1048 = vst.msk [vmem:[#allocation3 + $0x51] sm:$0xff] %vm989_vm2, %v1028_v58  ;;  %v1076_v61 = vpack.c.bf16 %v3613_v59, %v1068_v56 }
 0x183   : > { %v1060_v62 = vpack.c.bf16 %v3615_v60, %v1052_v57  ;;  %v1030_v1 = vpop.permute.xlu1 %1029  ;;  %v3641_v15 = vld [vmem:[#allocation3 + $0x30] sm:$0xff]  ;;  %v3147_v57 = vld [vmem:[%s4077_s5 + $0x48] sm:$0xff]  }
 0x184   : > { %1049 = vst.msk [vmem:[#allocation3 + $0x61] sm:$0xff] %vm989_vm2, %v1030_v1  ;;  %2875 = vmatprep.mubr.msk.bf16.mxu1 %vm989_vm2, %v1076_v61  ;;  %v3664_v20 = vld [vmem:[#allocation3 + $0x41] sm:$0xff]  ;;  %v3695_v30 = vld [vmem:[#allocation3 + $0x12] sm:$0xff] }
 0x185   : > { %2887 = vmatprep.mubr.msk.bf16.mxu0 %vm989_vm2, %v1060_v62  ;;  %v1032_v8 = vpop.permute.xlu0 %1031  ;;  %v3637_v12 = vld [vmem:[#allocation3 + $0x21] sm:$0xff]  ;;  %v1271_v36 = vpack.c.bf16 %v3695_v30, %v1263_v29  ;;  %v3723_v39 = vld [vmem:[#allocation3 + $0x32] sm:$0xff] }
 0x186   : > { %v3639_v14 = vld [vmem:[#allocation3 + $0x20] sm:$0xff]  ;;  %1050 = vst.msk [vmem:[#allocation3 + $0x71] sm:$0xff] %vm989_vm2, %v1032_v8  ;;  %v3646_v16 = vpack.c.bf16 %v3631_v2, %v3637_v12  ;;  %v1499_v1 = vpack.c.bf16 %v3637_v12, %v3613_v59  ;;  %v1500_v8 = vpack.c.bf16 %v3664_v20, %v3631_v2  ;;  %v3150_v59 = vld [vmem:[%s4077_s5 + $0x60] sm:$0xff]  }
 0x187   : > { %v3650_v17 = vpack.c.bf16 %v3641_v15, %v3639_v14  ;;  %v1034_v19 = vpop.permute.xlu1 %1033  ;;  %v1056_v24 = vld [vmem:[#allocation3 + $0x40] sm:$0xff]  ;;  %v1385_v55 = vpack.c.bf16 %v3639_v14, %v3615_v60  ;;  %v3149_v14 = vld [vmem:[%s4077_s5 + $0x58] sm:$0xff]  }
 0x188   : > { %1051 = vst.msk [vmem:[#allocation3 + $0x81] sm:$0xff] %vm989_vm2, %v1034_v19  ;;  %2876 = vmatmul.mubr.msk.bf16.vlgmr.msra.gmra.mrb[16].mxu1 %vm989_vm2, %v3646_v16  ;;  %v3715_v37 = vld [vmem:[#allocation3 + $0x22] sm:$0xff]  ;;  %v1386_v56 = vpack.c.bf16 %v1056_v24, %v3641_v15 }
 0x189   : > { %2888 = vmatmul.mubr.msk.bf16.vlgmr.msra.gmra.mrb[0].mxu0 %vm989_vm2, %v3650_v17  ;;  %v3671_v23 = vld [vmem:[#allocation3 + $0x51] sm:$0xff]  ;;  %v3727_v40 = vpack.c.bf16 %v3723_v39, %v3715_v37  ;;  %v1267_v42 = vld [vmem:[#allocation3 + $0x42] sm:$0xff] }
 0x18a   : > { %2896 = vmatpush3.bf16.msra.mxu0 %v3450_v41  ;;  %v3673_v25 = vld [vmem:[#allocation3 + $0x50] sm:$0xff]  ;;  %v3677_v26 = vpack.c.bf16 %v3671_v23, %v3664_v20  ;;  %v3148_v60 = vld [vmem:[%s4077_s5 + $0x50] sm:$0xff]   ;;  %v1614_v19 = vpack.c.bf16 %v1267_v42, %v3723_v39  ;;  %v3151_v20 = vld [vmem:[%s4077_s5 + $0x68] sm:$0xff]  }
 0x18b   : > { %v3680_v27 = vpack.c.bf16 %v3673_v25, %v1056_v24  ;;  %2897 = vmatprep.subr.bf16.mxu0 %v3143_v18  ;;  %v3693_v41 = vld [vmem:[#allocation3 + $0x61] sm:$0xff]  ;;  %v3721_v38 = vld [vmem:[#allocation3 + $0x52] sm:$0xff] }
 0x18c   : > { %2879 = vmatprep.mubr.msk.bf16.mxu1 %vm989_vm2, %v3677_v26  ;;  %v1058_v32 = vld [vmem:[#allocation3 + $0x60] sm:$0xff]  ;;  %v3733_v44 = vpack.c.bf16 %v3721_v38, %v1267_v42  ;;  %v1501_v15 = vpack.c.bf16 %v3693_v41, %v3671_v23  ;;  %v1727_v39 = vld [vmem:[#allocation3 + $0x90] sm:$0xff] }
 0x18d   : > { %2891 = vmatprep.mubr.msk.bf16.mxu0 %vm989_vm2, %v3680_v27  ;;  %v3697_v31 = vld [vmem:[#allocation3 + $0x71] sm:$0xff]  ;;  %v1269_v51 = vld [vmem:[#allocation3 + $0x62] sm:$0xff]  ;;  %v1387_v58 = vpack.c.bf16 %v1058_v32, %v3673_v25 }
 0x18e   : > { %v1059_v33 = vld [vmem:[#allocation3 + $0x70] sm:$0xff]  ;;  %2898 = vmatpush3.bf16.msra.mxu0 %v3143_v18  ;;  %v3701_v34 = vpack.c.bf16 %v3697_v31, %v3693_v41  ;;  %v1613_v18 = vpack.c.bf16 %v3715_v37, %v3695_v30  ;;  %v1615_v23 = vpack.c.bf16 %v1269_v51, %v3721_v38  ;;  %v3152_v24 = vld [vmem:[%s4077_s5 + $0x70] sm:$0xff]   ;;  %v3824_v41 = vpop.permute.xlu0 %2136 }
 0x18f   : > { %v3703_v35 = vpack.c.bf16 %v1059_v33, %v1058_v32  ;;  %2907 = vmatprep.subr.bf16.mxu0 %v3144_v28  ;;  %v3746_v48 = vld [vmem:[#allocation3 + $0x72] sm:$0xff]  ;;  %v1384_v61 = vld [vmem:[#allocation3 + $0x80] sm:$0xff] }
 0x190   : > { %2880 = vmatmul.mubr.msk.bf16.gmra.mrb[20].mxu1 %vm989_vm2, %v3701_v34  ;;  %v3753_v54 = vpack.c.bf16 %v3746_v48, %v1269_v51  ;;  %v1388_v62 = vpack.c.bf16 %v1384_v61, %v1059_v33  ;;  %v3802_v12 = vld [vmem:[#allocation3 + $0x81] sm:$0xff]  ;;  %v1731_v42 = vpack.c.bf16 %v1727_v39, %v1384_v61 }
 0x191   : > { %2892 = vmatmul.mubr.msk.bf16.gmra.mrb[4].mxu0 %vm989_vm2, %v3703_v35  ;;  %v1502_v2 = vpack.c.bf16 %v3802_v12, %v3697_v31  ;;  %v3820_v25 = vld [vmem:[#allocation3 + $0x82] sm:$0xff] }
 0x192   : > { %2899 = vmatprep.mubr.msk.bf16.mxu0 %vm989_vm2, %v1271_v36  ;;  %v1616_v29 = vpack.c.bf16 %v3820_v25, %v3746_v48  ;;  %v3831_v31 = vpop.permute.xlu0 %2140  ;;  %v3153_v36 = vld [vmem:[%s4077_s5 + $0x78] sm:$0xff]  }
 0x196   : > { %v3837_v33 = vpop.permute.xlu0 %2144 }
 0x199   : > { %2900 = vmatmul.mubr.msk.bf16.vlgmr.msra.gmra.mrb[0].mxu0 %vm989_vm2, %v3727_v40 }
 0x19a   : > { %2908 = vmatpush3.bf16.msra.mxu0 %v3144_v28  ;;  %2903 = vmatprep.mubr.msk.bf16.mxu0 %vm989_vm2, %v3733_v44  ;;  %v3822_v28 = vpop.permute.xlu1 %2138  ;;  %v2149_v38 = vpop.permute.xlu0 %2148 }
 0x19b   : > { %2909 = vmatprep.subr.bf16.mxu0 %v3145_v43  ;;  %v2166_v51 = vmax.f32 %v3585_v9, %v2149_v38 }
 0x19e   : > { %2910 = vmatpush3.bf16.msra.mxu0 %v3145_v43  ;;  %v3829_v30 = vpop.permute.xlu1 %2142 }
 0x19f   : > { %2919 = vmatprep.subr.bf16.mxu0 %v3146_v45 }
 0x1a1   : > { %2904 = vmatmul.mubr.msk.bf16.gmra.mrb[4].mxu0 %vm989_vm2, %v3753_v54 }
 0x1a2   : > { %2911 = vmatprep.mubr.msk.bf16.mxu0 %vm989_vm2, %v1385_v55  ;;  %v3835_v32 = vpop.permute.xlu1 %2146  ;;  %v3155_v55 = vld [vmem:[%s4077_s5 + $0x88] sm:$0xff]  }
 0x1a6   : > { %v2151_v37 = vpop.permute.xlu1 %2150 }
 0x1a7   : > { %v2167_v48 = vmax.f32 %v3595_v50, %v2151_v37 }
 0x1a9   : > { %2912 = vmatmul.mubr.msk.bf16.vlgmr.msra.gmra.mrb[0].mxu0 %vm989_vm2, %v1386_v56 }
 0x1aa   : > { %2920 = vmatpush3.bf16.msra.mxu0 %v3146_v45  ;;  %2915 = vmatprep.mubr.msk.bf16.mxu0 %vm989_vm2, %v1387_v58  ;;  %v3849_v43 = vpop.permute.xlu1 %2194  ;;  %v3851_v45 = vpop.permute.xlu0 %2192  ;;  %v2174_v58 = vmax.f32 %v2166_v51, %v3355_v11 }
 0x1ab   : > { %2921 = vmatprep.subr.bf16.mxu0 %v3147_v57 }
 0x1ae   : > { %2922 = vmatpush3.bf16.msra.mxu0 %v3147_v57 }
 0x1af   : > { %2931 = vmatprep.subr.bf16.mxu0 %v3148_v60 }
 0x1b1   : > { %2916 = vmatmul.mubr.msk.bf16.gmra.mrb[4].mxu0 %vm989_vm2, %v1388_v62 }
 0x1b2   : > { %2923 = vmatprep.mubr.msk.bf16.mxu0 %vm989_vm2, %v1499_v1 }
 0x1b9   : > { %2924 = vmatmul.mubr.msk.bf16.vlgmr.msra.gmra.mrb[0].mxu0 %vm989_vm2, %v1500_v8 }
 0x1ba   : > { %2932 = vmatpush3.bf16.msra.mxu0 %v3148_v60  ;;  %2927 = vmatprep.mubr.msk.bf16.mxu0 %vm989_vm2, %v1501_v15  ;;  %v1841_v60 = vld [vmem:[#allocation3 + $0x91] sm:$0xff] }
 0x1bb   : > { %2933 = vmatprep.subr.bf16.mxu0 %v3149_v14 }
 0x1be   : > { %2934 = vmatpush3.bf16.msra.mxu0 %v3149_v14  ;;  %v1845_v14 = vpack.c.bf16 %v1841_v60, %v3802_v12 }
 0x1bf   : > { %2943 = vmatprep.subr.bf16.mxu0 %v3150_v59 }
 0x1c1   : > { %2928 = vmatmul.mubr.msk.bf16.gmra.mrb[4].mxu0 %vm989_vm2, %v1502_v2  ;;  %v1955_v2 = vld [vmem:[#allocation3 + $0x92] sm:$0xff] }
 0x1c2   : > { %2935 = vmatprep.mubr.msk.bf16.mxu0 %vm989_vm2, %v1613_v18  ;;  %v3156_v18 = vld [vmem:[#allocation4] sm:$0xff] }
 0x1c9   : > { %2936 = vmatmul.mubr.msk.bf16.vlgmr.msra.gmra.mrb[0].mxu0 %vm989_vm2, %v1614_v19  ;;  %v2160_v19 = vmax.f32 %v3156_v18, %v3824_v41 }
 0x1ca   : > { %2944 = vmatpush3.bf16.msra.mxu0 %v3150_v59  ;;  %2939 = vmatprep.mubr.msk.bf16.mxu0 %vm989_vm2, %v1615_v23  ;;  %v3157_v23 = vld [vmem:[#allocation4 + $0x11] sm:$0xff] }
 0x1cb   : > { %2945 = vmatprep.subr.bf16.mxu0 %v3151_v20 }
 0x1ce   : > { %2946 = vmatpush3.bf16.msra.mxu0 %v3151_v20  ;;  %v1959_v20 = vpack.c.bf16 %v1955_v2, %v3820_v25  ;;  %v2165_v25 = vmax.f32 %v3587_v10, %v3835_v32 }
 0x1cf   : > { %2955 = vmatprep.subr.bf16.mxu0 %v3152_v24 }
 0x1d1   : > { %2940 = vmatmul.mubr.msk.bf16.gmra.mrb[4].mxu0 %vm989_vm2, %v1616_v29 }
 0x1d2   : > { %2947 = vmatprep.mubr.msk.bf16.mxu0 %vm989_vm2, %v3650_v17  ;;  %v3154_v17 = vld [vmem:[%s4077_s5 + $0x80] sm:$0xff]  }
 0x1d9   : > { %2948 = vmatmul.mubr.msk.bf16.vlgmr.msra.gmra.mrb[0].mxu0 %vm989_vm2, %v3680_v27  ;;  %v3856_v27 = vpop.permute.xlu1 %2198 }
 0x1da   : > { %2956 = vmatpush3.bf16.msra.mxu0 %v3152_v24  ;;  %2951 = vmatprep.mubr.msk.bf16.mxu0 %vm989_vm2, %v3703_v35  ;;  %v3858_v35 = vpop.permute.xlu0 %2196 }
 0x1db   : > { %2957 = vmatprep.subr.bf16.mxu0 %v3153_v36 }
 0x1dd   : > { %v3865_v56 = vpop.permute.xlu1 %2202 }
 0x1de   : > { %2958 = vmatpush3.bf16.msra.mxu0 %v3153_v36  ;;  %v3867_v57 = vpop.permute.xlu0 %2200 }
 0x1df   : > { %2967 = vmatprep.subr.bf16.mxu0 %v3154_v17 }
 0x1e1   : > { %2952 = vmatmul.mubr.msk.bf16.gmra.mrb[4].mxu0 %vm989_vm2, %v1731_v42  ;;  %v2207_v61 = vpop.permute.xlu1 %2206 }
 0x1e2   : > { %2959 = vmatprep.mubr.msk.bf16.mxu0 %vm989_vm2, %v3646_v16  ;;  %v2175_v16 = vmax.f32 %v2167_v48, %v3363_v13  ;;  %v2205_v62 = vpop.permute.xlu0 %2204 }
 0x1e3   : > { %v2222_v8 = vmax.f32 %v2174_v58, %v2205_v62  ;;  %v3161_v62 = vld [vmem:[#allocation4 + $0x41] sm:$0xff] }
 0x1e4   : > { %v2223_v1 = vmax.f32 %v2175_v16, %v2207_v61 }
 0x1e5   : > { %v2243_v15 = vpop.permute.xlu1 %2242 }
 0x1e6   : > { %v2241_v59 = vpop.permute.xlu0 %2240 }
 0x1e9   : > { %2960 = vmatmul.mubr.msk.bf16.vlgmr.msra.gmra.mrb[0].mxu0 %vm989_vm2, %v3677_v26  ;;  %v2247_v11 = vpop.permute.xlu1 %2246  ;;  %v2161_v26 = vmax.f32 %v3571_v47, %v3822_v28  ;;  %v2168_v28 = vmax.f32 %v2160_v19, %v3551_v46  ;;  %v2164_v46 = vmax.f32 %v3577_v6, %v3837_v33 }
 0x1ea   : > { %2968 = vmatpush3.bf16.msra.mxu0 %v3154_v17  ;;  %2963 = vmatprep.mubr.msk.bf16.mxu0 %vm989_vm2, %v3701_v34  ;;  %v2245_v13 = vpop.permute.xlu0 %2244 }
 0x1eb   : > { %2969 = vmatprep.subr.bf16.mxu0 %v3155_v55  ;;  %v2169_v24 = vmax.f32 %v2161_v26, %v3157_v23  ;;  %v2216_v42 = vmax.f32 %v2168_v28, %v3851_v45 }
 0x1ed   : > { %v2251_v34 = vpop.permute.xlu1 %2250  ;;  %v2217_v41 = vmax.f32 %v2169_v24, %v3849_v43  ;;  %v2264_v61 = vmax.f32 %v2216_v42, %v2241_v59 }
 0x1ee   : > { %2970 = vmatpush3.bf16.msra.mxu0 %v3155_v55  ;;  %v2249_v12 = vpop.permute.xlu0 %2248  ;;  %v3160_v55 = vld [vmem:[#allocation4 + $0x51] sm:$0xff] }
 0x1ef   : > { %v2173_v16 = vmax.f32 %v2165_v25, %v3160_v55  ;;  %v2265_v58 = vmax.f32 %v2217_v41, %v2243_v15 }
 0x1f1   : > { %2964 = vmatmul.mubr.msk.bf16.gmra.mrb[4].mxu0 %vm989_vm2, %v1845_v14 }
 0x1f2   : > { %2971 = vmatprep.mubr.msk.bf16.mxu0 %vm989_vm2, %v3727_v40  ;;  %v2163_v40 = vmax.f32 %v3579_v7, %v3829_v30  ;;  %v2253_v29 = vpop.permute.xlu0 %2252  ;;  %v3158_v30 = vld [vmem:[#allocation4 + $0x31] sm:$0xff] }
 0x1f3   : > { %v3894_v37 = vmax.f32 %v2222_v8, %v2253_v29  ;;  %v2221_v8 = vmax.f32 %v2173_v16, %v3865_v56 }
 0x1f4   : > { %v2171_v38 = vmax.f32 %v2163_v40, %v3158_v30 }
 0x1f5   : > { %v2269_v19 = vmax.f32 %v2221_v8, %v2251_v34 }
 0x1f6   : > { %v2273_v39 = vpop.permute.xlu0 %2272  ;;  %v2219_v51 = vmax.f32 %v2171_v38, %v3856_v27 }
 0x1f7   : > { %v2296_v33 = vmax.f32 %v2264_v61, %v2273_v39 }
 0x1f8   : > { %v2267_v45 = vmax.f32 %v2219_v51, %v2247_v11 }
 0x1f9   : > { %2972 = vmatmul.mubr.msk.bf16.vlgmr.msra.gmra.mrb[0].mxu0 %vm989_vm2, %v3733_v44  ;;  %v2255_v44 = vpop.permute.xlu1 %2254 }
 0x1fa   : > { %2975 = vmatprep.mubr.msk.bf16.mxu0 %vm989_vm2, %v3753_v54  ;;  %v2162_v54 = vmax.f32 %v3569_v5, %v3831_v31  ;;  %v3892_v36 = vmax.f32 %v2223_v1, %v2255_v44  ;;  %v3159_v31 = vld [vmem:[#allocation4 + $0x21] sm:$0xff]  ;;  %v2277_v32 = vpop.permute.xlu0 %2276  ;;  %v2172_v1 = vmax.f32 %v2164_v46, %v3161_v62 }
 0x1fc   : > { %v2170_v48 = vmax.f32 %v2162_v54, %v3159_v31  ;;  %v2220_v27 = vmax.f32 %v2172_v1, %v3867_v57 }
 0x1fd   : > { %v2275_v17 = vpop.permute.xlu1 %2274 }
 0x1fe   : > { %v2218_v43 = vmax.f32 %v2170_v48, %v3858_v35  ;;  %v2297_v14 = vmax.f32 %v2265_v58, %v2275_v17  ;;  %v2281_v2 = vpop.permute.xlu0 %2280  ;;  %v2268_v23 = vmax.f32 %v2220_v27, %v2249_v12 }
 0x200   : > { %v2266_v18 = vmax.f32 %v2218_v43, %v2245_v13  ;;  %v2305_v35 = vmax.f32 %v2297_v14, %v3569_v5  ;;  %v2304_v13 = vmax.f32 %v2296_v33, %v3571_v47  ;;  %v2300_v5 = vmax.f32 %v2268_v23, %v2281_v2 }
 0x201   : > { %2976 = vmatmul.mubr.msk.bf16.gmra.mrb[4].mxu0 %vm989_vm2, %v1959_v20  ;;  %v2279_v60 = vpop.permute.xlu1 %2278 }
 0x202   : > { %v2299_v20 = vmax.f32 %v2267_v45, %v2279_v60  ;;  %v3909_v40 = vpop.permute.xlu0 %2284  ;;  %v2298_v59 = vmax.f32 %v2266_v18, %v2277_v32  ;;  %v2677_v45 = vld [vmem:[%s4078_s6] ss:$0 sm:$0xff] }
 0x203   : > { %v2302_v11 = vmax.f32 %v3894_v37, %v3909_v40 }
 0x204   : > { %v2307_v34 = vmax.f32 %v2299_v20, %v3577_v6  ;;  %v2306_v28 = vmax.f32 %v2298_v59, %v3579_v7  ;;  %v2308_v7 = vmax.f32 %v2300_v5, %v3587_v10 }
 0x205   : > { %v2283_v26 = vpop.permute.xlu1 %2282 }
 0x206   : > { %v2313_v57 = vpop.permute.xlu0 %2312  ;;  %v2301_v44 = vmax.f32 %v2269_v19, %v2283_v26 }
 0x207   : > { %v2336_v54 = vmax.f32 %v2304_v13, %v2313_v57 }
 0x208   : > { %v2309_v6 = vmax.f32 %v2301_v44, %v3585_v9 }
 0x209   : > { %v3907_v15 = vpop.permute.xlu1 %2286  ;;  %v2344_v41 = vmax.f32 %v2336_v54, %v3605_v53 }
 0x20a   : > { %v2303_v56 = vmax.f32 %v3892_v36, %v3907_v15  ;;  %v2317_v38 = vpop.permute.xlu0 %2316 }
 0x20b   : > { %v2338_v12 = vmax.f32 %v2306_v28, %v2317_v38  ;;  %2392 = vrot.lane.b32.xlu0 %v2344_v41, %s3231_s13 }
 0x20d   : > { %v2315_v24 = vpop.permute.xlu1 %2314  ;;  %v2346_v42 = vmax.f32 %v2338_v12, %v3622_v0 }
 0x20e   : > { %v2337_v29 = vmax.f32 %v2305_v35, %v2315_v24  ;;  %v2321_v51 = vpop.permute.xlu0 %2320 }
 0x20f   : > { %2396 = vrot.lane.b32.xlu0 %v2346_v42, %s3231_s13  ;;  %v2340_v9 = vmax.f32 %v2308_v7, %v2321_v51  ;;  %v2311_v42 = vmax.f32 %v2303_v56, %v3593_v49 }
 0x210   : > { %v2345_v25 = vmax.f32 %v2337_v29, %v3603_v52 }
 0x211   : > { %v2319_v30 = vpop.permute.xlu1 %2318  ;;  %v2348_v10 = vmax.f32 %v2340_v9, %v3635_v4 }
 0x212   : > { %v2339_v47 = vmax.f32 %v2307_v34, %v2319_v30  ;;  %2394 = vrot.lane.b32.xlu1 %v2345_v25, %s3231_s13 }
 0x213   : > { %2400 = vrot.lane.b32.xlu0 %v2348_v10, %s3231_s13 }
 0x214   : > { %v2347_v53 = vmax.f32 %v2339_v47, %v3620_v63  ;;  %v2310_v47 = vmax.f32 %v2302_v11, %v3595_v50 }
 0x215   : > { %v2323_v48 = vpop.permute.xlu1 %2322 }
 0x216   : > { %v3921_v17 = vpop.f32.mrb[8].mxu1  ;;  %v2341_v46 = vmax.f32 %v2309_v6, %v2323_v48  ;;  %2398 = vrot.lane.b32.xlu1 %v2347_v53, %s3231_s13  ;;  %v2325_v53 = vpop.permute.xlu0 %2324 }
 0x217   : > { %v3926_v39 = vpop.f32.mrb[9].mxu1  ;;  %v2342_v9 = vmax.f32 %v2310_v47, %v2325_v53 }
 0x218   : > { %v3929_v52 = vpop.f32.mrb[10].mxu1  ;;  %v2349_v55 = vmax.f32 %v2341_v46, %v3633_v3 }
 0x219   : > { %v3933_v31 = vpop.f32.mrb[11].mxu1  ;;  %v2327_v51 = vpop.permute.xlu1 %2326  ;;  %v2350_v11 = vmax.f32 %v2342_v9, %v3668_v22 }
 0x21a   : > { %2402 = vrot.lane.b32.xlu1 %v2349_v55, %s3231_s13  ;;  %v2343_v50 = vmax.f32 %v2311_v42, %v2327_v51  ;;  %v2590_v55 = vld [vmem:[%s4076_s4] ss:$0 sm:$0xff] }
 0x21c   : > { %v2351_v49 = vmax.f32 %v2343_v50, %v3666_v21 }
 0x21e   : > { %v3939_v16 = vpop.f32.mrb[12].mxu1 }
 0x21f   : > { %v3942_v63 = vpop.f32.mrb[13].mxu1 }
 0x220   : > { %v3945_v0 = vpop.f32.mrb[14].mxu1 }
 0x221   : > { %v3947_v58 = vpop.f32.mrb[15].mxu1 }
 0x25b   : > { %v2877_v60 = vpop.f32.mrb[16].mxu1 }
 0x25c   : > { %v1143_v32 = vpop.f32.mrb[17].mxu1 }
 0x25d   : > { %v2878_v43 = vpop.f32.mrb[18].mxu1 }
 0x25e   : > { %v1146_v61 = vpop.f32.mrb[19].mxu1 }
 0x263   : > { %v2881_v62 = vpop.f32.mrb[20].mxu1 }
 0x264   : > { %v1159_v3 = vpop.f32.mrb[21].mxu1 }
 0x265   : > { %v2882_v1 = vpop.f32.mrb[22].mxu1 }
 0x266   : > { %v1162_v4 = vpop.f32.mrb[23].mxu1 }
 0x27d   : > { %v2393_v36 = vpop.permute.xlu0 %2392 }
 0x281   : > { %v2397_v56 = vpop.permute.xlu0 %2396 }
 0x284   : > { %v2395_v15 = vpop.permute.xlu1 %2394 }
 0x285   : > { %v2401_v22 = vpop.permute.xlu0 %2400 }
 0x288   : > { %v2399_v10 = vpop.permute.xlu1 %2398 }
 0x28c   : > { %v2403_v21 = vpop.permute.xlu1 %2402 }
 0x2cc   : > { %v2973_v8 = vpop.f32.mrb[0].mxu0 }
 0x2cd   : > { %v2979_v14 = vadd.f32 %v2973_v8, %v2877_v60  ;;  %v2023_v26 = vpop.f32.mrb[1].mxu0  ;;  %v975_v60 = vadd.f32 %v3921_v17, %v2590_v55 }
 0x2ce   : > { %v2980_v2 = vadd.f32 %v2023_v26, %v1143_v32  ;;  %v2974_v18 = vpop.f32.mrb[2].mxu0  ;;  %v976_v32 = vadd.f32 %v3929_v52, %v2590_v55 }
 0x2cf   : > { %v2071_v33 = vadd.f32 %v2979_v14, %v2677_v45  ;;  %v2981_v27 = vadd.f32 %v2974_v18, %v2878_v43  ;;  %v2026_v19 = vpop.f32.mrb[3].mxu0  ;;  %v983_v43 = vmax.f32 %v975_v60, 0.0 }
 0x2d0   : > { %v2982_v20 = vadd.f32 %v2026_v19, %v1146_v61  ;;  %v2069_v59 = vadd.f32 %v2980_v2, %v2677_v45  ;;  %v973_v61 = vadd.f32 %v2590_v55, %v3926_v39 }
 0x2d1   : > { %v2079_v35 = vmax.f32 %v2071_v33, 0.0  ;;  %v2072_v13 = vadd.f32 %v2981_v27, %v2677_v45  ;;  %v977_v33 = vadd.f32 %v2590_v55, %v3942_v63  ;;  %v980_v63 = vadd.f32 %v3945_v0, %v2590_v55 }
 0x2d2   : > { %v2070_v24 = vadd.f32 %v2982_v20, %v2677_v45  ;;  %v2077_v34 = vmax.f32 %v2069_v59, 0.0  ;;  %v979_v59 = vadd.f32 %v3939_v16, %v2590_v55 }
 0x2d3   : > { %v2080_v23 = vmax.f32 %v2072_v13, 0.0  ;;  %2364 = vrot.lane.b32.xlu0 %v2079_v35, %s3229_s8  ;;  %v978_v35 = vadd.f32 %v2590_v55, %v3947_v58  ;;  %v988_v58 = vmax.f32 %v980_v63, 0.0 }
 0x2d4   : > { %v2977_v57 = vpop.f32.mrb[4].mxu0  ;;  %v2078_v5 = vmax.f32 %v2070_v24, 0.0 }
 0x2d5   : > { %v2983_v44 = vadd.f32 %v2977_v57, %v2881_v62  ;;  %v2039_v29 = vpop.f32.mrb[5].mxu0  ;;  %2366 = vrot.lane.b32.xlu1 %v2080_v23, %s3229_s8  ;;  %v985_v23 = vmax.f32 %v977_v33, 0.0  ;;  %v986_v57 = vmax.f32 %v978_v35, 0.0 }
 0x2d6   : > { %v2984_v54 = vadd.f32 %v2039_v29, %v1159_v3  ;;  %v2978_v28 = vpop.f32.mrb[6].mxu0  ;;  %v984_v3 = vmax.f32 %v976_v32, 0.0 }
 0x2d7   : > { %v2075_v25 = vadd.f32 %v2983_v44, %v2677_v45  ;;  %v2985_v41 = vadd.f32 %v2978_v28, %v2882_v1  ;;  %v2042_v30 = vpop.f32.mrb[7].mxu0  ;;  %2360 = vrot.lane.b32.xlu0 %v2077_v34, %s3229_s8  ;;  %v974_v1 = vadd.f32 %v2590_v55, %v3933_v31  ;;  %v987_v44 = vmax.f32 %v979_v59, 0.0 }
 0x2d8   : > { %v2986_v38 = vadd.f32 %v2042_v30, %v1162_v4  ;;  %v2073_v6 = vadd.f32 %v2984_v54, %v2677_v45 }
 0x2d9   : > { %v2083_v12 = vmax.f32 %v2075_v25, 0.0  ;;  %v2076_v7 = vadd.f32 %v2985_v41, %v2677_v45  ;;  %2362 = vrot.lane.b32.xlu1 %v2078_v5, %s3229_s8  ;;  %v982_v31 = vmax.f32 %v974_v1, 0.0 }
 0x2da   : > { %v2074_v46 = vadd.f32 %v2986_v38, %v2677_v45  ;;  %v2081_v37 = vmax.f32 %v2073_v6, 0.0  ;;  %v981_v45 = vmax.f32 %v973_v61, 0.0 }
 0x2db   : > { %v2084_v48 = vmax.f32 %v2076_v7, 0.0  ;;  %2372 = vrot.lane.b32.xlu0 %v2083_v12, %s3229_s8 }
 0x2dc   : > { %v2082_v40 = vmax.f32 %v2074_v46, 0.0 }
 0x2dd   : > { %2374 = vrot.lane.b32.xlu1 %v2084_v48, %s3229_s8 }
 0x2df   : > { %2368 = vrot.lane.b32.xlu0 %v2081_v37, %s3229_s8 }
 0x2e1   : > { %2370 = vrot.lane.b32.xlu1 %v2082_v40, %s3229_s8  ;;  %s2522_s8 = sshll.u32 %s269_s18, 6 }
 0x2e2   : > { %s3984_s19 = scalar_lea.vmem [#allocation5], %s2522_s8 }
 0x2e3   : > { %2404 = vrot.lane.b32.xlu0 %v2350_v11, %s3231_s13  ;;  %s2456_s22 = sshll.u32 %s3984_s19, 4  ;;  %s4021_s22 = int_to_ptr.vmem [resolvable:$true] %s2456_s22 }
 0x2e4   : > { %s3162_s9 = scalar_lea.vmem %s4021_s22, 1024 }
 0x2e5   : > { %2406 = vrot.lane.b32.xlu1 %v2351_v49, %s3231_s13  ;;  %p3163_p11 = scmp.ne.s32.totalorder %s4021_s22, %s3162_s9  ;;  %s3232_s13 = smov [#allocation5]  }
 0x2e6   : > { %s3166_s14 = sshll.u32 %s3232_s13, 4  ;;  %s3167_s14 = int_to_ptr.vmem [resolvable:$false] %s3166_s14 }
 0x2e7   : > { %p3164_p12 = pnand %p3163_p11, %p3313_p5  ;;  %s3168_s15 = scalar_lea.vmem %s3167_s14, 2048 }
 0x2e8   : > { %p3169_p0 = scmp.lt.s32.totalorder %s4021_s22, %s3167_s14  ;;  %p3170_p1 = scmp.lt.s32.totalorder %s3168_s15, %s3162_s9 }
 0x2e9   : > { %p3165_p13 = pneg %p3164_p12 }
 0x2ea   : > { %p3171_p2 = por %p3170_p1, %p3169_p0 }
 0x2ec   : > { %p3172_p3 = pnand %p3171_p2, %p3165_p13 }
 0x345   : > { %v2365_v62 = vpop.permute.xlu0 %2364 }
 0x346   : > { %v2418_v4 = vsel %vm989_vm2, %v983_v43, %v2365_v62 }
 0x347   : > { %v2427_v8 = vsel %vm2424_vm4, %v2418_v4, %v2397_v56  ;;  %v2367_v17 = vpop.permute.xlu1 %2366 }
 0x348   : > { %2436 = vst.msk [vmem:[%s3984_s19 + $0x10] sm:$0xff] %vm2433_vm5, %v2427_v8  ;;  %v2419_v39 = vsel %vm989_vm2, %v984_v3, %v2367_v17 }
 0x349   : > { %v2428_v52 = vsel %vm2424_vm4, %v2419_v39, %v2399_v10  ;;  %v2361_v14 = vpop.permute.xlu0 %2360 }
 0x34a   : > { %2437 = vst.msk [vmem:[%s3984_s19 + $0x18] sm:$0xff] %vm2433_vm5, %v2428_v52  ;;  %v2416_v26 = vsel %vm989_vm2, %v981_v45, %v2361_v14 }
 0x34b   : > { %v2425_v2 = vsel %vm2424_vm4, %v2416_v26, %v2393_v36  ;;  %v2363_v18 = vpop.permute.xlu1 %2362 }
 0x34c   : > { %2434 = vst.msk [vmem:[%s3984_s19] sm:$0xff] %vm2433_vm5, %v2425_v2  ;;  %v2417_v27 = vsel %vm989_vm2, %v982_v31, %v2363_v18 }
 0x34d   : > { %v2426_v19 = vsel %vm2424_vm4, %v2417_v27, %v2395_v15  ;;  %v2373_v20 = vpop.permute.xlu0 %2372 }
 0x34e   : > { %2435 = vst.msk [vmem:[%s3984_s19 + $0x8] sm:$0xff] %vm2433_vm5, %v2426_v19  ;;  %v2422_v0 = vsel %vm989_vm2, %v987_v44, %v2373_v20 }
 0x34f   : > { %v2375_v13 = vpop.permute.xlu1 %2374 }
 0x350   : > { %v2423_v41 = vsel %vm989_vm2, %v988_v58, %v2375_v13 }
 0x351   : > { %v2369_v24 = vpop.permute.xlu0 %2368 }
 0x352   : > { %v2420_v34 = vsel %vm989_vm2, %v985_v23, %v2369_v24 }
 0x353   : > { %v2429_v29 = vsel %vm2424_vm4, %v2420_v34, %v2401_v22  ;;  %v2371_v54 = vpop.permute.xlu1 %2370 }
 0x354   : > { %2438 = vst.msk [vmem:[%s3984_s19 + $0x20] sm:$0xff] %vm2433_vm5, %v2429_v29  ;;  %v2421_v16 = vsel %vm989_vm2, %v986_v57, %v2371_v54 }
 0x355   : > { %v2430_v28 = vsel %vm2424_vm4, %v2421_v16, %v2403_v21  ;;  %v2405_v5 = vpop.permute.xlu0 %2404 }
 0x356   : > { %2439 = vst.msk [vmem:[%s3984_s19 + $0x28] sm:$0xff] %vm2433_vm5, %v2430_v28  ;;  %v2431_v25 = vsel %vm2424_vm4, %v2422_v0, %v2405_v5 }
 0x357   : > { %2440 = vst.msk [vmem:[%s3984_s19 + $0x30] sm:$0xff] %vm2433_vm5, %v2431_v25  ;;  %v2407_v30 = vpop.permute.xlu1 %2406 }
 0x358   : > { %v2432_v38 = vsel %vm2424_vm4, %v2423_v41, %v2407_v30 }
 0x359   : > { %2441 = vst.msk [vmem:[%s3984_s19 + $0x38] sm:$0xff] %vm2433_vm5, %v2432_v38 }
 0x35a   : > { %3175 = shalt.err (!%p3172_p3)
}
 0x35b   : > { %s3176_s16 = scalar_lea.hbm %s4019_s23, 1024  ;;  %s3180_s8 = scalar_lea.hbm %s4079_s7, 2048 }
 0x35c   : > { %p3177_p4 = scmp.ne.s32.totalorder %s4019_s23, %s3176_s16  ;;  %p3181_p9 = scmp.lt.u32.totalorder %s4019_s23, %s4079_s7 }
 0x35d   : > { %p3182_p10 = scmp.lt.u32.totalorder %s3180_s8, %s3176_s16  ;;  %p3184_p12 = scmp.lt.u32.totalorder %s3176_s16, %s4019_s23 }
 0x35e   : > { %p3178_p7 = pnand %p3177_p4, %p3313_p5 }
 0x35f   : > { %p3183_p11 = por %p3182_p10, %p3181_p9 }
 0x360   : > { %p3179_p8 = pneg %p3178_p7 }
 0x361   : > { %p3185_p13 = por %p3184_p12, %p3183_p11 }
 0x363   : > { %p3186_p0 = pnand %p3185_p13, %p3179_p8 }
 0x365   : > { %3189 = shalt.err (!%p3186_p0)
}
 0x366   : > { %s3233_s21 = smov 128   ;;  %s3234_s28 = smov 8  }
 0x367   : > { %3067 = dma.vmem_to_hbm [thread:$0]  (%p3313_p5), %s4021_s22, 1024, %s4019_s23, %s4031_s29, %s3233_s21, %s3233_s21, %s3234_s28  }
 0x368 PF: > { %p3073_p1 = scmp.ge.s32.totalorder %s3224_s27, 2  ;;  %s2471_s9 = sand.u32 1, %s3212_s24  }
 0x369   : > { %s2472_s13 = scalar_lea.sflag [#allocation6], %s2471_s9 }
 0x36a   : > { %p3070_p2 = pnand %p3073_p1, %p3317_p6 }
 0x36c   : > { %3207 = dma.done.wait (!%p3070_p2), %s2472_s13, 1024  }
 0x36d   : > { %3209 = vsyncadd (!%p3070_p2), %s2472_s13, 4294966272  ;;  %p17_p3 = scmp.ge.s32.totalorder %s3300_s30, 4   ;;  %s4082_s24 = smov %s3216_s25 }
 0x36e   : > { %s4083_s25 = smov %s3220_s26  ;;  %s4084_s26 = smov %s3311_s10 }
 0x36f   : > { %s4085_s27 = smov %s3300_s30  ;;  %19 = sbr.rel (!%p17_p3) target bundleno = 3 (0x3), region = 98 }
 0x376   :  { %2477 = vsyncpa [#allocation6], 1 }
 0x377   :  { %2479 = vsyncpa [#allocation6 + $0x1], 1 }

</bundles_post_ra>
